<compile_context>
chip_gen: v6e
topology: v6e:2x2x1
jax: 0.10.0
libtpu: 0.0.40
codegen_flags: <defaults>
</compile_context>

<pallas_src>
import math
import functools

import jax
import jax.numpy as jnp
from jax.experimental import pallas as pl
from jax.experimental.pallas import tpu as pltpu


def _layernorm(v, w, b, eps=1e-5):
    mu = jnp.mean(v, axis=-1, keepdims=True)
    var = jnp.mean(jnp.square(v - mu), axis=-1, keepdims=True)
    return (v - mu) * jax.lax.rsqrt(var + eps) * w + b


def encoder_stack_kernel(x_ref, qkv_add_ref, w_qkv_ref, w_out_ref, b_out_ref,
                         w1_ref, b1_ref, w2_ref, b2_ref,
                         pre_w_ref, pre_b_ref, post_w_ref, post_b_ref, gamma_ref,
                         o_ref, *, num_heads):
    layer = pl.program_id(1)

    # Layer 0: seed the resident output block (the layer-to-layer carry) with x.
    @pl.when(layer == 0)
    def _():
        o_ref[...] = x_ref[...]

    Bt, L, D = o_ref.shape
    N = Bt * L
    H = num_heads
    hd = D // H

    x = o_ref[...].astype(jnp.float32).reshape(N, D)

    pre_w, pre_b = pre_w_ref[...], pre_b_ref[...]          # (1, D) each
    post_w, post_b = post_w_ref[...], post_b_ref[...]
    gamma = gamma_ref[...]

    # ---------------- self-attention sub-block ----------------
    value = _layernorm(x, pre_w, pre_b)                    # pre_norm[0], (N, D) f32
    qkv = jnp.dot(value.astype(jnp.bfloat16), w_qkv_ref[...],
                  preferred_element_type=jnp.float32)      # (N, 3D) f32, wide MXU call
    # add precomputed [(pos @ Wq + bq)*scale | pos @ Wk + bk | bv] (broadcast over Bt);
    # the 1/sqrt(head_dim) q-scale is already folded into w_qkv / qkv_add.
    qkv = (qkv.reshape(Bt, L, 3 * D) + qkv_add_ref[...]).astype(jnp.bfloat16)

    head_outs = []
    for h in range(H):                                     # static head loop (no carried acc)
        lo = h * hd
        qh = qkv[:, :, lo:lo + hd]                         # (Bt, L, hd) bf16
        kh = qkv[:, :, D + lo:D + lo + hd]
        vh = qkv[:, :, 2 * D + lo:2 * D + lo + hd]
        s = jnp.einsum("bld,bmd->blm", qh, kh,
                       preferred_element_type=jnp.float32)                # (Bt, L, L)
        s = s - jnp.max(s, axis=-1, keepdims=True)
        p = jnp.exp(s)
        p = p * pl.reciprocal(jnp.sum(p, axis=-1, keepdims=True), approx=True)
        oh = jnp.einsum("blm,bmd->bld", p.astype(jnp.bfloat16), vh,
                        preferred_element_type=jnp.float32)               # (Bt, L, hd)
        head_outs.append(oh.astype(jnp.bfloat16))

    heads = jnp.concatenate(head_outs, axis=-1).reshape(N, D)             # (N, D) bf16
    # single full-contraction-depth out projection (K = D)
    attn = jnp.dot(heads, w_out_ref[...],
                   preferred_element_type=jnp.float32) + b_out_ref[...]   # (N, D)

    # layer_scale_block[0]: residual + gamma * post_norm[0](attn)
    y = x + gamma * _layernorm(attn, post_w, post_b)

    # ---------------- feed-forward sub-block ----------------
    z = _layernorm(y, pre_w, pre_b)                        # pre_norm[1] (shared params)
    hid = jnp.dot(z.astype(jnp.bfloat16), w1_ref[...],
                  preferred_element_type=jnp.float32) + b1_ref[...]
    hid = jnp.maximum(hid, 0.0)                            # ReLU
    ff = jnp.dot(hid.astype(jnp.bfloat16), w2_ref[...],
                 preferred_element_type=jnp.float32) + b2_ref[...]

    out = y + gamma * _layernorm(ff, post_w, post_b)       # layer_scale_block[1]
    o_ref[...] = out.reshape(Bt, L, D).astype(o_ref.dtype)


def sinusoidal_pos_encoding(length, dim):
    position = jnp.arange(length, dtype=jnp.float32)[:, None]
    div_term = jnp.exp(jnp.arange(0, dim, 2, dtype=jnp.float32)
                       * -(math.log(10000.0) / dim))
    pe = jnp.zeros((length, dim), dtype=jnp.float32)
    pe = pe.at[:, 0::2].set(jnp.sin(position * div_term))
    pe = pe.at[:, 1::2].set(jnp.cos(position * div_term))
    return pe


def _vmem_capacity_bytes():
    """Physical VMEM per core (generation-aware), with a conservative fallback."""
    try:
        return int(pltpu.get_tpu_info().vmem_capacity_bytes)
    except Exception:
        return 64 << 20          # v7x per-TC size: safe lower bound everywhere


def _working_set_bytes(Bt, L, D, dff):
    """Estimate of the peak VMEM working set for one grid step (incl. intermediates)."""
    N = Bt * L
    f32, bf16 = 4, 2
    weights = (L * 3 * D * f32                         # qkv additive term
               + D * 3 * D * bf16                      # fused qkv weight
               + D * D * bf16 + D * f32                # out-proj w, b
               + D * dff * bf16 + dff * f32            # linear1 w, b
               + dff * D * bf16 + D * f32              # linear2 w, b
               + 5 * D * f32)                          # norm params + gamma
    io_blocks = 2 * Bt * L * D * f32                   # x in block + out carry block
    pipelined = 2 * (weights + io_blocks)              # double buffering
    work = (N * 3 * D * (f32 + bf16)                   # qkv f32 result + bf16 copy
            + 2 * Bt * L * L * f32                     # per-head scores + probs
            + N * D * bf16                             # concatenated head outputs
            + 4 * N * D * f32                          # x, attn, y, ff residual copies
            + N * dff * (f32 + bf16))                  # ffn hidden + bf16 cast
    return pipelined + work


def _pick_batch_block(B, L, D, dff, budget):
    """Largest useful divisor of B that fits the VMEM budget.

    Targets >= 256 rows per matmul (v6e/v7x MXU depth) and, when B >= 2, keeps
    the parallel batch axis at >= 2 grid steps so both v7x TensorCores get work.
    """
    cands = [d for d in range(1, B + 1)
             if B % d == 0 and _working_set_bytes(d, L, D, dff) <= budget]
    if not cands:
        cands = [1]
    if B >= 2:
        two = [d for d in cands if B // d >= 2]
        if two:
            cands = two
    enough = [d for d in cands if d * L >= 256]
    return min(enough) if enough else max(cands)


def _vmem_limit_bytes(Bt, L, D, dff, budget):
    est = _working_set_bytes(Bt, L, D, dff)
    return int(min(max(est + (8 << 20), 32 << 20), budget))


def _stack_layer_params(params_list, pos, num_heads):
    """Stack per-layer params along a leading layer axis, pre-transposed/cast.

    The 1/sqrt(head_dim) q-scale is folded into the Wq columns and the q part of
    the additive term so the kernel does no per-head scaling.
    """
    D = params_list[0]["in_w"].shape[1]
    L = pos.shape[0]
    hd = D // num_heads
    scale = 1.0 / math.sqrt(hd)

    def stack(fn, dtype=None):
        a = jnp.stack([fn(p) for p in params_list], axis=0)
        return a.astype(dtype) if dtype is not None else a

    def qkv_add(p):
        wq, wk = p["in_w"][0:D], p["in_w"][D:2 * D]
        bq = p["in_b"][:, 0:D]
        bk = p["in_b"][:, D:2 * D]
        bv = p["in_b"][:, 2 * D:3 * D]
        add_q = (pos @ wq.T + bq) * scale            # pos contribution to q (scale folded)
        add_k = pos @ wk.T + bk                      # pos contribution to k
        add_v = jnp.broadcast_to(bv, (L, D))         # v gets bias only, no pos
        return jnp.concatenate([add_q, add_k, add_v], axis=-1)   # (L, 3D)

    def qkv_weight(p):
        w = p["in_w"].T                              # (D, 3D), columns [0:D] are q
        return jnp.concatenate([w[:, :D] * scale, w[:, D:]], axis=-1)

    return dict(
        qkv_add=stack(qkv_add, jnp.float32),                                   # (NL, L, 3D)
        w_qkv=stack(qkv_weight, jnp.bfloat16),                                 # (NL, D, 3D)
        w_out=stack(lambda p: p["op_w"].T, jnp.bfloat16),                      # (NL, D, D)
        b_out=stack(lambda p: p["op_b"], jnp.float32),                         # (NL, 1, D)
        w1=stack(lambda p: p["w1"].T, jnp.bfloat16),                           # (NL, D, dff)
        b1=stack(lambda p: p["b1"], jnp.float32),                              # (NL, 1, dff)
        w2=stack(lambda p: p["w2"].T, jnp.bfloat16),                           # (NL, dff, D)
        b2=stack(lambda p: p["b2"], jnp.float32),                              # (NL, 1, D)
        pre_w=stack(lambda p: p["pre_w"], jnp.float32),
        pre_b=stack(lambda p: p["pre_b"], jnp.float32),
        post_w=stack(lambda p: p["post_w"], jnp.float32),
        post_b=stack(lambda p: p["post_b"], jnp.float32),
        gamma=stack(lambda p: p["gamma"], jnp.float32),
    )


def transformer_encoder_frame(x, params_list, num_heads, block_batch=None):
    """TransformerEncoderFrame.forward (norm=None), all layers fused in one kernel."""
    B, L, D = x.shape
    NL = len(params_list)
    dff = params_list[0]["w1"].shape[0]

    pos = sinusoidal_pos_encoding(L, D)
    sp = _stack_layer_params(params_list, pos, num_heads)

    budget = int(_vmem_capacity_bytes() * 0.75)        # ~96 MiB on v5e/v6e, ~48 MiB on v7x
    Bt = block_batch if block_batch is not None else _pick_batch_block(B, L, D, dff, budget)
    assert B % Bt == 0, "block_batch must divide batch size"

    def lay(*shape):
        # Per-layer parameter: leading layer axis selected by the grid, squeezed away.
        n = len(shape)
        return pl.BlockSpec((None,) + shape, lambda b, l: (l,) + (0,) * n)

    kernel = functools.partial(encoder_stack_kernel, num_heads=num_heads)

    return pl.pallas_call(
        kernel,
        out_shape=jax.ShapeDtypeStruct((B, L, D), x.dtype),
        grid_spec=pltpu.PrefetchScalarGridSpec(
            num_scalar_prefetch=0,
            grid=(B // Bt, NL),
            in_specs=[
                pl.BlockSpec((Bt, L, D), lambda b, l: (b, 0, 0)),   # x (read at layer 0)
                lay(L, 3 * D),                                      # qkv additive term
                lay(D, 3 * D),                                      # fused qkv weight
                lay(D, D),                                          # out-proj weight
                lay(1, D),                                          # out-proj bias
                lay(D, dff), lay(1, dff),                           # linear1 w, b
                lay(dff, D), lay(1, D),                             # linear2 w, b
                lay(1, D), lay(1, D),                               # pre-norm w, b (shared)
                lay(1, D), lay(1, D),                               # post-norm w, b (shared)
                lay(1, D),                                          # layer-scale gamma (shared)
            ],
            out_specs=pl.BlockSpec((Bt, L, D), lambda b, l: (b, 0, 0)),
        ),
        compiler_params=pltpu.CompilerParams(
            dimension_semantics=("parallel", "arbitrary"),
            vmem_limit_bytes=_vmem_limit_bytes(Bt, L, D, dff, budget),
        ),
    )(x, sp["qkv_add"], sp["w_qkv"], sp["w_out"], sp["b_out"],
      sp["w1"], sp["b1"], sp["w2"], sp["b2"],
      sp["pre_w"], sp["pre_b"], sp["post_w"], sp["post_b"], sp["gamma"])


def init_encoder_layer_params(key, D, dff):
    ks = jax.random.split(key, 6)
    s = 0.02
    return dict(
        pre_w=jnp.ones((1, D), jnp.float32), pre_b=jnp.zeros((1, D), jnp.float32),
        post_w=jnp.ones((1, D), jnp.float32), post_b=jnp.zeros((1, D), jnp.float32),
        gamma=jnp.full((1, D), 0.1, jnp.float32),
        in_w=jax.random.normal(ks[0], (3 * D, D), jnp.float32) * s,
        in_b=jnp.zeros((1, 3 * D), jnp.float32),
        op_w=jax.random.normal(ks[1], (D, D), jnp.float32) * s,
        op_b=jnp.zeros((1, D), jnp.float32),
        w1=jax.random.normal(ks[2], (dff, D), jnp.float32) * s,
        b1=jax.random.normal(ks[3], (1, dff), jnp.float32) * s,
        w2=jax.random.normal(ks[4], (D, dff), jnp.float32) * s,
        b2=jax.random.normal(ks[5], (1, D), jnp.float32) * s,
    )


# ---- pure-JAX f32 reference for a correctness sanity check -----------------
def encoder_layer_ref(x, pos, p, num_heads):
    def ln(v, w, b):
        mu = v.mean(-1, keepdims=True)
        var = ((v - mu) ** 2).mean(-1, keepdims=True)
        return (v - mu) / jnp.sqrt(var + 1e-5) * w + b

    B, L, D = x.shape
    hd = D // num_heads
    value = ln(x, p["pre_w"], p["pre_b"])
    qk = value + pos[None]
    q = qk @ p["in_w"][0:D].T + p["in_b"][:, 0:D]
    k = qk @ p["in_w"][D:2 * D].T + p["in_b"][:, D:2 * D]
    v = value @ p["in_w"][2 * D:].T + p["in_b"][:, 2 * D:]
    q = q.reshape(B, L, num_heads, hd) / math.sqrt(hd)
    k = k.reshape(B, L, num_heads, hd)
    v = v.reshape(B, L, num_heads, hd)
    s = jnp.einsum("blhd,bmhd->bhlm", q, k)
    a = jnp.einsum("bhlm,bmhd->blhd", jax.nn.softmax(s, axis=-1), v).reshape(B, L, D)
    a = a @ p["op_w"].T + p["op_b"]
    y = x + p["gamma"] * ln(a, p["post_w"], p["post_b"])
    z = ln(y, p["pre_w"], p["pre_b"])
    h = jax.nn.relu(z @ p["w1"].T + p["b1"])
    ff = h @ p["w2"].T + p["b2"]
    return y + p["gamma"] * ln(ff, p["post_w"], p["post_b"])


if __name__ == "__main__":
    B, L, D, H, DFF, NUM_LAYERS = 2, 8, 32, 4, 64, 2

    key = jax.random.PRNGKey(0)
    kx, kp = jax.random.split(key)
    x = jax.random.normal(kx, (B, L, D), jnp.float32)
    layer_keys = jax.random.split(kp, NUM_LAYERS)
    params_list = [init_encoder_layer_params(k, D, DFF) for k in layer_keys]

    out = transformer_encoder_frame(x, params_list, H)
    out = jax.block_until_ready(out)

    # sanity-check against a pure-JAX f32 reference (kernel uses bf16 matmul
    # operands with f32 accumulation, so tolerance is relaxed accordingly)
    pos = sinusoidal_pos_encoding(L, D)
    ref = x
    for p in params_list:
        ref = encoder_layer_ref(ref, pos, p, H)
    err = float(jnp.max(jnp.abs(out - ref)))
    assert err < 3e-2, f"max abs err {err}"

    print("KERNEL_OK")
</pallas_src>

<mosaic_0001>
module attributes {stable_mosaic.version = 11 : i64} {
  func.func @encoder_stack_kernel(%arg0: i32, %arg1: i32, %arg2: memref<1x8x32xf32, #tpu.memory_space<vmem>>, %arg3: memref<1x8x96xf32, #tpu.memory_space<vmem>>, %arg4: memref<1x32x96xbf16, #tpu.memory_space<vmem>>, %arg5: memref<1x32x32xbf16, #tpu.memory_space<vmem>>, %arg6: memref<1x1x32xf32, #tpu.memory_space<vmem>>, %arg7: memref<1x32x64xbf16, #tpu.memory_space<vmem>>, %arg8: memref<1x1x64xf32, #tpu.memory_space<vmem>>, %arg9: memref<1x64x32xbf16, #tpu.memory_space<vmem>>, %arg10: memref<1x1x32xf32, #tpu.memory_space<vmem>>, %arg11: memref<1x1x32xf32, #tpu.memory_space<vmem>>, %arg12: memref<1x1x32xf32, #tpu.memory_space<vmem>>, %arg13: memref<1x1x32xf32, #tpu.memory_space<vmem>>, %arg14: memref<1x1x32xf32, #tpu.memory_space<vmem>>, %arg15: memref<1x1x32xf32, #tpu.memory_space<vmem>>, %arg16: memref<1x8x32xf32, #tpu.memory_space<vmem>>) attributes {dimension_semantics = [#tpu.dimension_semantics<parallel>, #tpu.dimension_semantics<arbitrary>], iteration_bounds = array<i64: 2, 2>, scalar_prefetch = 0 : i64, scratch_operands = 0 : i64, tpu.core_type = #tpu.core_type<tc>, window_params = [{transform_indices = @transform_0, window_bounds = array<i64: 1, 8, 32>}, {transform_indices = @transform_1, window_bounds = array<i64: 1, 8, 96>}, {transform_indices = @transform_2, window_bounds = array<i64: 1, 32, 96>}, {transform_indices = @transform_3, window_bounds = array<i64: 1, 32, 32>}, {transform_indices = @transform_4, window_bounds = array<i64: 1, 1, 32>}, {transform_indices = @transform_5, window_bounds = array<i64: 1, 32, 64>}, {transform_indices = @transform_6, window_bounds = array<i64: 1, 1, 64>}, {transform_indices = @transform_7, window_bounds = array<i64: 1, 64, 32>}, {transform_indices = @transform_8, window_bounds = array<i64: 1, 1, 32>}, {transform_indices = @transform_9, window_bounds = array<i64: 1, 1, 32>}, {transform_indices = @transform_10, window_bounds = array<i64: 1, 1, 32>}, {transform_indices = @transform_11, window_bounds = array<i64: 1, 1, 32>}, {transform_indices = @transform_12, window_bounds = array<i64: 1, 1, 32>}, {transform_indices = @transform_13, window_bounds = array<i64: 1, 1, 32>}, {transform_indices = @transform_14, window_bounds = array<i64: 1, 8, 32>}]} {
    %c0_i32 = arith.constant 0 : i32
    %0 = arith.cmpi eq, %arg1, %c0_i32 : i32
    %1 = arith.extui %0 : i1 to i32
    %c0_i32_0 = arith.constant 0 : i32
    %2 = arith.cmpi ne, %1, %c0_i32_0 : i32
    scf.if %2 {
      %c0_85 = arith.constant 0 : index
      %c0_86 = arith.constant 0 : index
      %c0_87 = arith.constant 0 : index
      %216 = vector.load %arg2[%c0_85, %c0_86, %c0_87] : memref<1x8x32xf32, #tpu.memory_space<vmem>>, vector<1x8x32xf32>
      %c0_88 = arith.constant 0 : index
      %c0_89 = arith.constant 0 : index
      %c0_90 = arith.constant 0 : index
      %217 = vector.load %arg16[%c0_88, %c0_89, %c0_90] : memref<1x8x32xf32, #tpu.memory_space<vmem>>, vector<1x8x32xf32>
      tpu.vector_store %arg16[%c0_88, %c0_89, %c0_90], %216 {strides = array<i32>} : memref<1x8x32xf32, #tpu.memory_space<vmem>>, vector<1x8x32xf32>,
    } else {
    }
    %c0 = arith.constant 0 : index
    %c0_1 = arith.constant 0 : index
    %c0_2 = arith.constant 0 : index
    %3 = vector.load %arg16[%c0, %c0_1, %c0_2] : memref<1x8x32xf32, #tpu.memory_space<vmem>>, vector<1x8x32xf32>
    %4 = vector.shape_cast %3 : vector<1x8x32xf32> to vector<8x32xf32>
    %c0_3 = arith.constant 0 : index
    %c0_4 = arith.constant 0 : index
    %c0_5 = arith.constant 0 : index
    %5 = vector.load %arg11[%c0_3, %c0_4, %c0_5] : memref<1x1x32xf32, #tpu.memory_space<vmem>>, vector<1x1x32xf32>
    %6 = vector.shape_cast %5 : vector<1x1x32xf32> to vector<1x32xf32>
    %c0_6 = arith.constant 0 : index
    %c0_7 = arith.constant 0 : index
    %c0_8 = arith.constant 0 : index
    %7 = vector.load %arg12[%c0_6, %c0_7, %c0_8] : memref<1x1x32xf32, #tpu.memory_space<vmem>>, vector<1x1x32xf32>
    %8 = vector.shape_cast %7 : vector<1x1x32xf32> to vector<1x32xf32>
    %c0_9 = arith.constant 0 : index
    %c0_10 = arith.constant 0 : index
    %c0_11 = arith.constant 0 : index
    %9 = vector.load %arg13[%c0_9, %c0_10, %c0_11] : memref<1x1x32xf32, #tpu.memory_space<vmem>>, vector<1x1x32xf32>
    %10 = vector.shape_cast %9 : vector<1x1x32xf32> to vector<1x32xf32>
    %c0_12 = arith.constant 0 : index
    %c0_13 = arith.constant 0 : index
    %c0_14 = arith.constant 0 : index
    %11 = vector.load %arg14[%c0_12, %c0_13, %c0_14] : memref<1x1x32xf32, #tpu.memory_space<vmem>>, vector<1x1x32xf32>
    %12 = vector.shape_cast %11 : vector<1x1x32xf32> to vector<1x32xf32>
    %c0_15 = arith.constant 0 : index
    %c0_16 = arith.constant 0 : index
    %c0_17 = arith.constant 0 : index
    %13 = vector.load %arg15[%c0_15, %c0_16, %c0_17] : memref<1x1x32xf32, #tpu.memory_space<vmem>>, vector<1x1x32xf32>
    %14 = vector.shape_cast %13 : vector<1x1x32xf32> to vector<1x32xf32>
    %cst = arith.constant dense<0.000000e+00> : vector<8xf32>
    %15 = vector.multi_reduction <add>, %4, %cst [1] : vector<8x32xf32> to vector<8xf32>
    %16 = vector.shape_cast %15 : vector<8xf32> to vector<8x1xf32>
    %cst_18 = arith.constant 3.200000e+01 : f32
    %17 = vector.broadcast %cst_18 : f32 to vector<8x1xf32>
    %18 = arith.divf %16, %17 : vector<8x1xf32>
    %19 = vector.broadcast %18 : vector<8x1xf32> to vector<8x32xf32>
    %20 = arith.subf %4, %19 : vector<8x32xf32>
    %21 = arith.mulf %20, %20 : vector<8x32xf32>
    %cst_19 = arith.constant dense<0.000000e+00> : vector<8xf32>
    %22 = vector.multi_reduction <add>, %21, %cst_19 [1] : vector<8x32xf32> to vector<8xf32>
    %23 = vector.shape_cast %22 : vector<8xf32> to vector<8x1xf32>
    %cst_20 = arith.constant 3.200000e+01 : f32
    %24 = vector.broadcast %cst_20 : f32 to vector<8x1xf32>
    %25 = arith.divf %23, %24 : vector<8x1xf32>
    %26 = vector.broadcast %18 : vector<8x1xf32> to vector<8x32xf32>
    %27 = arith.subf %4, %26 : vector<8x32xf32>
    %cst_21 = arith.constant 9.99999974E-6 : f32
    %28 = vector.broadcast %cst_21 : f32 to vector<8x1xf32>
    %29 = arith.addf %25, %28 : vector<8x1xf32>
    %30 = math.rsqrt %29 : vector<8x1xf32>
    %31 = vector.broadcast %30 : vector<8x1xf32> to vector<8x32xf32>
    %32 = arith.mulf %27, %31 : vector<8x32xf32>
    %33 = vector.broadcast %6 : vector<1x32xf32> to vector<8x32xf32>
    %34 = arith.mulf %32, %33 : vector<8x32xf32>
    %35 = vector.broadcast %8 : vector<1x32xf32> to vector<8x32xf32>
    %36 = arith.addf %34, %35 : vector<8x32xf32>
    %37 = arith.truncf %36 : vector<8x32xf32> to vector<8x32xbf16>
    %c0_22 = arith.constant 0 : index
    %c0_23 = arith.constant 0 : index
    %c0_24 = arith.constant 0 : index
    %38 = vector.load %arg4[%c0_22, %c0_23, %c0_24] : memref<1x32x96xbf16, #tpu.memory_space<vmem>>, vector<1x32x96xbf16>
    %39 = vector.shape_cast %38 : vector<1x32x96xbf16> to vector<32x96xbf16>
    %cst_25 = arith.constant dense<0.000000e+00> : vector<8x96xf32>
    %40 = tpu.matmul %37, %39, %cst_25 {dimension_numbers = #tpu.dot_dimension_numbers<[1], [0], [0], [1], [0, 0, 1, 1], [], []>} : vector<8x32xbf16>, vector<32x96xbf16>, vector<8x96xf32> -> vector<8x96xf32>
    %41 = vector.shape_cast %40 : vector<8x96xf32> to vector<1x8x96xf32>
    %c0_26 = arith.constant 0 : index
    %c0_27 = arith.constant 0 : index
    %c0_28 = arith.constant 0 : index
    %42 = vector.load %arg3[%c0_26, %c0_27, %c0_28] : memref<1x8x96xf32, #tpu.memory_space<vmem>>, vector<1x8x96xf32>
    %43 = vector.shape_cast %42 : vector<1x8x96xf32> to vector<8x96xf32>
    %44 = vector.shape_cast %43 : vector<8x96xf32> to vector<1x8x96xf32>
    %45 = arith.addf %41, %44 : vector<1x8x96xf32>
    %46 = arith.truncf %45 : vector<1x8x96xf32> to vector<1x8x96xbf16>
    %47 = vector.extract_strided_slice %46 {offsets = [0, 0, 0], sizes = [1, 8, 8], strides = [1, 1, 1]} : vector<1x8x96xbf16> to vector<1x8x8xbf16>
    %48 = vector.extract_strided_slice %46 {offsets = [0, 0, 32], sizes = [1, 8, 8], strides = [1, 1, 1]} : vector<1x8x96xbf16> to vector<1x8x8xbf16>
    %49 = vector.extract_strided_slice %46 {offsets = [0, 0, 64], sizes = [1, 8, 8], strides = [1, 1, 1]} : vector<1x8x96xbf16> to vector<1x8x8xbf16>
    "tpu.trace_start"() <{level = 10 : i32, message = "bld,bmd->blm"}> : () -> ()
    %cst_29 = arith.constant dense<0.000000e+00> : vector<1x8x8xf32>
    %50 = tpu.matmul %47, %48, %cst_29 {dimension_numbers = #tpu.dot_dimension_numbers<[2], [2], [1], [1], [0, 0, 0, 1, 1, 1], [0], [0]>} : vector<1x8x8xbf16>, vector<1x8x8xbf16>, vector<1x8x8xf32> -> vector<1x8x8xf32>
    "tpu.trace_stop"() : () -> ()
    %cst_30 = arith.constant dense<0xFF800000> : vector<1x8xf32>
    %51 = vector.multi_reduction <maximumf>, %50, %cst_30 [2] : vector<1x8x8xf32> to vector<1x8xf32>
    %52 = vector.shape_cast %51 : vector<1x8xf32> to vector<1x8x1xf32>
    %53 = vector.broadcast %52 : vector<1x8x1xf32> to vector<1x8x8xf32>
    %54 = arith.subf %50, %53 : vector<1x8x8xf32>
    %55 = math.exp %54 : vector<1x8x8xf32>
    %cst_31 = arith.constant dense<0.000000e+00> : vector<1x8xf32>
    %56 = vector.multi_reduction <add>, %55, %cst_31 [2] : vector<1x8x8xf32> to vector<1x8xf32>
    %57 = vector.shape_cast %56 : vector<1x8xf32> to vector<1x8x1xf32>
    %58 = tpu.reciprocal %57 {approx = true} : vector<1x8x1xf32> -> vector<1x8x1xf32>
    %59 = vector.broadcast %58 : vector<1x8x1xf32> to vector<1x8x8xf32>
    %60 = arith.mulf %55, %59 : vector<1x8x8xf32>
    %61 = arith.truncf %60 : vector<1x8x8xf32> to vector<1x8x8xbf16>
    "tpu.trace_start"() <{level = 10 : i32, message = "blm,bmd->bld"}> : () -> ()
    %cst_32 = arith.constant dense<0.000000e+00> : vector<1x8x8xf32>
    %62 = tpu.matmul %61, %49, %cst_32 {dimension_numbers = #tpu.dot_dimension_numbers<[2], [1], [1], [2], [0, 0, 0, 1, 1, 2], [0], [0]>} : vector<1x8x8xbf16>, vector<1x8x8xbf16>, vector<1x8x8xf32> -> vector<1x8x8xf32>
    "tpu.trace_stop"() : () -> ()
    %63 = arith.truncf %62 : vector<1x8x8xf32> to vector<1x8x8xbf16>
    %64 = vector.extract_strided_slice %46 {offsets = [0, 0, 8], sizes = [1, 8, 8], strides = [1, 1, 1]} : vector<1x8x96xbf16> to vector<1x8x8xbf16>
    %65 = vector.extract_strided_slice %46 {offsets = [0, 0, 40], sizes = [1, 8, 8], strides = [1, 1, 1]} : vector<1x8x96xbf16> to vector<1x8x8xbf16>
    %66 = vector.extract_strided_slice %46 {offsets = [0, 0, 72], sizes = [1, 8, 8], strides = [1, 1, 1]} : vector<1x8x96xbf16> to vector<1x8x8xbf16>
    "tpu.trace_start"() <{level = 10 : i32, message = "bld,bmd->blm"}> : () -> ()
    %cst_33 = arith.constant dense<0.000000e+00> : vector<1x8x8xf32>
    %67 = tpu.matmul %64, %65, %cst_33 {dimension_numbers = #tpu.dot_dimension_numbers<[2], [2], [1], [1], [0, 0, 0, 1, 1, 1], [0], [0]>} : vector<1x8x8xbf16>, vector<1x8x8xbf16>, vector<1x8x8xf32> -> vector<1x8x8xf32>
    "tpu.trace_stop"() : () -> ()
    %cst_34 = arith.constant dense<0xFF800000> : vector<1x8xf32>
    %68 = vector.multi_reduction <maximumf>, %67, %cst_34 [2] : vector<1x8x8xf32> to vector<1x8xf32>
    %69 = vector.shape_cast %68 : vector<1x8xf32> to vector<1x8x1xf32>
    %70 = vector.broadcast %69 : vector<1x8x1xf32> to vector<1x8x8xf32>
    %71 = arith.subf %67, %70 : vector<1x8x8xf32>
    %72 = math.exp %71 : vector<1x8x8xf32>
    %cst_35 = arith.constant dense<0.000000e+00> : vector<1x8xf32>
    %73 = vector.multi_reduction <add>, %72, %cst_35 [2] : vector<1x8x8xf32> to vector<1x8xf32>
    %74 = vector.shape_cast %73 : vector<1x8xf32> to vector<1x8x1xf32>
    %75 = tpu.reciprocal %74 {approx = true} : vector<1x8x1xf32> -> vector<1x8x1xf32>
    %76 = vector.broadcast %75 : vector<1x8x1xf32> to vector<1x8x8xf32>
    %77 = arith.mulf %72, %76 : vector<1x8x8xf32>
    %78 = arith.truncf %77 : vector<1x8x8xf32> to vector<1x8x8xbf16>
    "tpu.trace_start"() <{level = 10 : i32, message = "blm,bmd->bld"}> : () -> ()
    %cst_36 = arith.constant dense<0.000000e+00> : vector<1x8x8xf32>
    %79 = tpu.matmul %78, %66, %cst_36 {dimension_numbers = #tpu.dot_dimension_numbers<[2], [1], [1], [2], [0, 0, 0, 1, 1, 2], [0], [0]>} : vector<1x8x8xbf16>, vector<1x8x8xbf16>, vector<1x8x8xf32> -> vector<1x8x8xf32>
    "tpu.trace_stop"() : () -> ()
    %80 = arith.truncf %79 : vector<1x8x8xf32> to vector<1x8x8xbf16>
    %81 = vector.extract_strided_slice %46 {offsets = [0, 0, 16], sizes = [1, 8, 8], strides = [1, 1, 1]} : vector<1x8x96xbf16> to vector<1x8x8xbf16>
    %82 = vector.extract_strided_slice %46 {offsets = [0, 0, 48], sizes = [1, 8, 8], strides = [1, 1, 1]} : vector<1x8x96xbf16> to vector<1x8x8xbf16>
    %83 = vector.extract_strided_slice %46 {offsets = [0, 0, 80], sizes = [1, 8, 8], strides = [1, 1, 1]} : vector<1x8x96xbf16> to vector<1x8x8xbf16>
    "tpu.trace_start"() <{level = 10 : i32, message = "bld,bmd->blm"}> : () -> ()
    %cst_37 = arith.constant dense<0.000000e+00> : vector<1x8x8xf32>
    %84 = tpu.matmul %81, %82, %cst_37 {dimension_numbers = #tpu.dot_dimension_numbers<[2], [2], [1], [1], [0, 0, 0, 1, 1, 1], [0], [0]>} : vector<1x8x8xbf16>, vector<1x8x8xbf16>, vector<1x8x8xf32> -> vector<1x8x8xf32>
    "tpu.trace_stop"() : () -> ()
    %cst_38 = arith.constant dense<0xFF800000> : vector<1x8xf32>
    %85 = vector.multi_reduction <maximumf>, %84, %cst_38 [2] : vector<1x8x8xf32> to vector<1x8xf32>
    %86 = vector.shape_cast %85 : vector<1x8xf32> to vector<1x8x1xf32>
    %87 = vector.broadcast %86 : vector<1x8x1xf32> to vector<1x8x8xf32>
    %88 = arith.subf %84, %87 : vector<1x8x8xf32>
    %89 = math.exp %88 : vector<1x8x8xf32>
    %cst_39 = arith.constant dense<0.000000e+00> : vector<1x8xf32>
    %90 = vector.multi_reduction <add>, %89, %cst_39 [2] : vector<1x8x8xf32> to vector<1x8xf32>
    %91 = vector.shape_cast %90 : vector<1x8xf32> to vector<1x8x1xf32>
    %92 = tpu.reciprocal %91 {approx = true} : vector<1x8x1xf32> -> vector<1x8x1xf32>
    %93 = vector.broadcast %92 : vector<1x8x1xf32> to vector<1x8x8xf32>
    %94 = arith.mulf %89, %93 : vector<1x8x8xf32>
    %95 = arith.truncf %94 : vector<1x8x8xf32> to vector<1x8x8xbf16>
    "tpu.trace_start"() <{level = 10 : i32, message = "blm,bmd->bld"}> : () -> ()
    %cst_40 = arith.constant dense<0.000000e+00> : vector<1x8x8xf32>
    %96 = tpu.matmul %95, %83, %cst_40 {dimension_numbers = #tpu.dot_dimension_numbers<[2], [1], [1], [2], [0, 0, 0, 1, 1, 2], [0], [0]>} : vector<1x8x8xbf16>, vector<1x8x8xbf16>, vector<1x8x8xf32> -> vector<1x8x8xf32>
    "tpu.trace_stop"() : () -> ()
    %97 = arith.truncf %96 : vector<1x8x8xf32> to vector<1x8x8xbf16>
    %98 = vector.extract_strided_slice %46 {offsets = [0, 0, 24], sizes = [1, 8, 8], strides = [1, 1, 1]} : vector<1x8x96xbf16> to vector<1x8x8xbf16>
    %99 = vector.extract_strided_slice %46 {offsets = [0, 0, 56], sizes = [1, 8, 8], strides = [1, 1, 1]} : vector<1x8x96xbf16> to vector<1x8x8xbf16>
    %100 = vector.extract_strided_slice %46 {offsets = [0, 0, 88], sizes = [1, 8, 8], strides = [1, 1, 1]} : vector<1x8x96xbf16> to vector<1x8x8xbf16>
    "tpu.trace_start"() <{level = 10 : i32, message = "bld,bmd->blm"}> : () -> ()
    %cst_41 = arith.constant dense<0.000000e+00> : vector<1x8x8xf32>
    %101 = tpu.matmul %98, %99, %cst_41 {dimension_numbers = #tpu.dot_dimension_numbers<[2], [2], [1], [1], [0, 0, 0, 1, 1, 1], [0], [0]>} : vector<1x8x8xbf16>, vector<1x8x8xbf16>, vector<1x8x8xf32> -> vector<1x8x8xf32>
    "tpu.trace_stop"() : () -> ()
    %cst_42 = arith.constant dense<0xFF800000> : vector<1x8xf32>
    %102 = vector.multi_reduction <maximumf>, %101, %cst_42 [2] : vector<1x8x8xf32> to vector<1x8xf32>
    %103 = vector.shape_cast %102 : vector<1x8xf32> to vector<1x8x1xf32>
    %104 = vector.broadcast %103 : vector<1x8x1xf32> to vector<1x8x8xf32>
    %105 = arith.subf %101, %104 : vector<1x8x8xf32>
    %106 = math.exp %105 : vector<1x8x8xf32>
    %cst_43 = arith.constant dense<0.000000e+00> : vector<1x8xf32>
    %107 = vector.multi_reduction <add>, %106, %cst_43 [2] : vector<1x8x8xf32> to vector<1x8xf32>
    %108 = vector.shape_cast %107 : vector<1x8xf32> to vector<1x8x1xf32>
    %109 = tpu.reciprocal %108 {approx = true} : vector<1x8x1xf32> -> vector<1x8x1xf32>
    %110 = vector.broadcast %109 : vector<1x8x1xf32> to vector<1x8x8xf32>
    %111 = arith.mulf %106, %110 : vector<1x8x8xf32>
    %112 = arith.truncf %111 : vector<1x8x8xf32> to vector<1x8x8xbf16>
    "tpu.trace_start"() <{level = 10 : i32, message = "blm,bmd->bld"}> : () -> ()
    %cst_44 = arith.constant dense<0.000000e+00> : vector<1x8x8xf32>
    %113 = tpu.matmul %112, %100, %cst_44 {dimension_numbers = #tpu.dot_dimension_numbers<[2], [1], [1], [2], [0, 0, 0, 1, 1, 2], [0], [0]>} : vector<1x8x8xbf16>, vector<1x8x8xbf16>, vector<1x8x8xf32> -> vector<1x8x8xf32>
    "tpu.trace_stop"() : () -> ()
    %114 = arith.truncf %113 : vector<1x8x8xf32> to vector<1x8x8xbf16>
    %115 = tpu.concatenate %63, %80, %97, %114 in 2 : vector<1x8x8xbf16>, vector<1x8x8xbf16>, vector<1x8x8xbf16>, vector<1x8x8xbf16> -> vector<1x8x32xbf16>
    %116 = vector.shape_cast %115 : vector<1x8x32xbf16> to vector<8x32xbf16>
    %c0_45 = arith.constant 0 : index
    %c0_46 = arith.constant 0 : index
    %c0_47 = arith.constant 0 : index
    %117 = vector.load %arg5[%c0_45, %c0_46, %c0_47] : memref<1x32x32xbf16, #tpu.memory_space<vmem>>, vector<1x32x32xbf16>
    %118 = vector.shape_cast %117 : vector<1x32x32xbf16> to vector<32x32xbf16>
    %cst_48 = arith.constant dense<0.000000e+00> : vector<8x32xf32>
    %119 = tpu.matmul %116, %118, %cst_48 {dimension_numbers = #tpu.dot_dimension_numbers<[1], [0], [0], [1], [0, 0, 1, 1], [], []>} : vector<8x32xbf16>, vector<32x32xbf16>, vector<8x32xf32> -> vector<8x32xf32>
    %c0_49 = arith.constant 0 : index
    %c0_50 = arith.constant 0 : index
    %c0_51 = arith.constant 0 : index
    %120 = vector.load %arg6[%c0_49, %c0_50, %c0_51] : memref<1x1x32xf32, #tpu.memory_space<vmem>>, vector<1x1x32xf32>
    %121 = vector.shape_cast %120 : vector<1x1x32xf32> to vector<1x32xf32>
    %122 = vector.broadcast %121 : vector<1x32xf32> to vector<8x32xf32>
    %123 = arith.addf %119, %122 : vector<8x32xf32>
    %cst_52 = arith.constant dense<0.000000e+00> : vector<8xf32>
    %124 = vector.multi_reduction <add>, %123, %cst_52 [1] : vector<8x32xf32> to vector<8xf32>
    %125 = vector.shape_cast %124 : vector<8xf32> to vector<8x1xf32>
    %cst_53 = arith.constant 3.200000e+01 : f32
    %126 = vector.broadcast %cst_53 : f32 to vector<8x1xf32>
    %127 = arith.divf %125, %126 : vector<8x1xf32>
    %128 = vector.broadcast %127 : vector<8x1xf32> to vector<8x32xf32>
    %129 = arith.subf %123, %128 : vector<8x32xf32>
    %130 = arith.mulf %129, %129 : vector<8x32xf32>
    %cst_54 = arith.constant dense<0.000000e+00> : vector<8xf32>
    %131 = vector.multi_reduction <add>, %130, %cst_54 [1] : vector<8x32xf32> to vector<8xf32>
    %132 = vector.shape_cast %131 : vector<8xf32> to vector<8x1xf32>
    %cst_55 = arith.constant 3.200000e+01 : f32
    %133 = vector.broadcast %cst_55 : f32 to vector<8x1xf32>
    %134 = arith.divf %132, %133 : vector<8x1xf32>
    %135 = vector.broadcast %127 : vector<8x1xf32> to vector<8x32xf32>
    %136 = arith.subf %123, %135 : vector<8x32xf32>
    %cst_56 = arith.constant 9.99999974E-6 : f32
    %137 = vector.broadcast %cst_56 : f32 to vector<8x1xf32>
    %138 = arith.addf %134, %137 : vector<8x1xf32>
    %139 = math.rsqrt %138 : vector<8x1xf32>
    %140 = vector.broadcast %139 : vector<8x1xf32> to vector<8x32xf32>
    %141 = arith.mulf %136, %140 : vector<8x32xf32>
    %142 = vector.broadcast %10 : vector<1x32xf32> to vector<8x32xf32>
    %143 = arith.mulf %141, %142 : vector<8x32xf32>
    %144 = vector.broadcast %12 : vector<1x32xf32> to vector<8x32xf32>
    %145 = arith.addf %143, %144 : vector<8x32xf32>
    %146 = vector.broadcast %14 : vector<1x32xf32> to vector<8x32xf32>
    %147 = arith.mulf %146, %145 : vector<8x32xf32>
    %148 = arith.addf %4, %147 : vector<8x32xf32>
    %cst_57 = arith.constant dense<0.000000e+00> : vector<8xf32>
    %149 = vector.multi_reduction <add>, %148, %cst_57 [1] : vector<8x32xf32> to vector<8xf32>
    %150 = vector.shape_cast %149 : vector<8xf32> to vector<8x1xf32>
    %cst_58 = arith.constant 3.200000e+01 : f32
    %151 = vector.broadcast %cst_58 : f32 to vector<8x1xf32>
    %152 = arith.divf %150, %151 : vector<8x1xf32>
    %153 = vector.broadcast %152 : vector<8x1xf32> to vector<8x32xf32>
    %154 = arith.subf %148, %153 : vector<8x32xf32>
    %155 = arith.mulf %154, %154 : vector<8x32xf32>
    %cst_59 = arith.constant dense<0.000000e+00> : vector<8xf32>
    %156 = vector.multi_reduction <add>, %155, %cst_59 [1] : vector<8x32xf32> to vector<8xf32>
    %157 = vector.shape_cast %156 : vector<8xf32> to vector<8x1xf32>
    %cst_60 = arith.constant 3.200000e+01 : f32
    %158 = vector.broadcast %cst_60 : f32 to vector<8x1xf32>
    %159 = arith.divf %157, %158 : vector<8x1xf32>
    %160 = vector.broadcast %152 : vector<8x1xf32> to vector<8x32xf32>
    %161 = arith.subf %148, %160 : vector<8x32xf32>
    %cst_61 = arith.constant 9.99999974E-6 : f32
    %162 = vector.broadcast %cst_61 : f32 to vector<8x1xf32>
    %163 = arith.addf %159, %162 : vector<8x1xf32>
    %164 = math.rsqrt %163 : vector<8x1xf32>
    %165 = vector.broadcast %164 : vector<8x1xf32> to vector<8x32xf32>
    %166 = arith.mulf %161, %165 : vector<8x32xf32>
    %167 = vector.broadcast %6 : vector<1x32xf32> to vector<8x32xf32>
    %168 = arith.mulf %166, %167 : vector<8x32xf32>
    %169 = vector.broadcast %8 : vector<1x32xf32> to vector<8x32xf32>
    %170 = arith.addf %168, %169 : vector<8x32xf32>
    %171 = arith.truncf %170 : vector<8x32xf32> to vector<8x32xbf16>
    %c0_62 = arith.constant 0 : index
    %c0_63 = arith.constant 0 : index
    %c0_64 = arith.constant 0 : index
    %172 = vector.load %arg7[%c0_62, %c0_63, %c0_64] : memref<1x32x64xbf16, #tpu.memory_space<vmem>>, vector<1x32x64xbf16>
    %173 = vector.shape_cast %172 : vector<1x32x64xbf16> to vector<32x64xbf16>
    %cst_65 = arith.constant dense<0.000000e+00> : vector<8x64xf32>
    %174 = tpu.matmul %171, %173, %cst_65 {dimension_numbers = #tpu.dot_dimension_numbers<[1], [0], [0], [1], [0, 0, 1, 1], [], []>} : vector<8x32xbf16>, vector<32x64xbf16>, vector<8x64xf32> -> vector<8x64xf32>
    %c0_66 = arith.constant 0 : index
    %c0_67 = arith.constant 0 : index
    %c0_68 = arith.constant 0 : index
    %175 = vector.load %arg8[%c0_66, %c0_67, %c0_68] : memref<1x1x64xf32, #tpu.memory_space<vmem>>, vector<1x1x64xf32>
    %176 = vector.shape_cast %175 : vector<1x1x64xf32> to vector<1x64xf32>
    %177 = vector.broadcast %176 : vector<1x64xf32> to vector<8x64xf32>
    %178 = arith.addf %174, %177 : vector<8x64xf32>
    %cst_69 = arith.constant 0.000000e+00 : f32
    %179 = vector.broadcast %cst_69 : f32 to vector<8x64xf32>
    %180 = arith.maximumf %178, %179 : vector<8x64xf32>
    %181 = arith.truncf %180 : vector<8x64xf32> to vector<8x64xbf16>
    %c0_70 = arith.constant 0 : index
    %c0_71 = arith.constant 0 : index
    %c0_72 = arith.constant 0 : index
    %182 = vector.load %arg9[%c0_70, %c0_71, %c0_72] : memref<1x64x32xbf16, #tpu.memory_space<vmem>>, vector<1x64x32xbf16>
    %183 = vector.shape_cast %182 : vector<1x64x32xbf16> to vector<64x32xbf16>
    %cst_73 = arith.constant dense<0.000000e+00> : vector<8x32xf32>
    %184 = tpu.matmul %181, %183, %cst_73 {dimension_numbers = #tpu.dot_dimension_numbers<[1], [0], [0], [1], [0, 0, 1, 1], [], []>} : vector<8x64xbf16>, vector<64x32xbf16>, vector<8x32xf32> -> vector<8x32xf32>
    %c0_74 = arith.constant 0 : index
    %c0_75 = arith.constant 0 : index
    %c0_76 = arith.constant 0 : index
    %185 = vector.load %arg10[%c0_74, %c0_75, %c0_76] : memref<1x1x32xf32, #tpu.memory_space<vmem>>, vector<1x1x32xf32>
    %186 = vector.shape_cast %185 : vector<1x1x32xf32> to vector<1x32xf32>
    %187 = vector.broadcast %186 : vector<1x32xf32> to vector<8x32xf32>
    %188 = arith.addf %184, %187 : vector<8x32xf32>
    %cst_77 = arith.constant dense<0.000000e+00> : vector<8xf32>
    %189 = vector.multi_reduction <add>, %188, %cst_77 [1] : vector<8x32xf32> to vector<8xf32>
    %190 = vector.shape_cast %189 : vector<8xf32> to vector<8x1xf32>
    %cst_78 = arith.constant 3.200000e+01 : f32
    %191 = vector.broadcast %cst_78 : f32 to vector<8x1xf32>
    %192 = arith.divf %190, %191 : vector<8x1xf32>
    %193 = vector.broadcast %192 : vector<8x1xf32> to vector<8x32xf32>
    %194 = arith.subf %188, %193 : vector<8x32xf32>
    %195 = arith.mulf %194, %194 : vector<8x32xf32>
    %cst_79 = arith.constant dense<0.000000e+00> : vector<8xf32>
    %196 = vector.multi_reduction <add>, %195, %cst_79 [1] : vector<8x32xf32> to vector<8xf32>
    %197 = vector.shape_cast %196 : vector<8xf32> to vector<8x1xf32>
    %cst_80 = arith.constant 3.200000e+01 : f32
    %198 = vector.broadcast %cst_80 : f32 to vector<8x1xf32>
    %199 = arith.divf %197, %198 : vector<8x1xf32>
    %200 = vector.broadcast %192 : vector<8x1xf32> to vector<8x32xf32>
    %201 = arith.subf %188, %200 : vector<8x32xf32>
    %cst_81 = arith.constant 9.99999974E-6 : f32
    %202 = vector.broadcast %cst_81 : f32 to vector<8x1xf32>
    %203 = arith.addf %199, %202 : vector<8x1xf32>
    %204 = math.rsqrt %203 : vector<8x1xf32>
    %205 = vector.broadcast %204 : vector<8x1xf32> to vector<8x32xf32>
    %206 = arith.mulf %201, %205 : vector<8x32xf32>
    %207 = vector.broadcast %10 : vector<1x32xf32> to vector<8x32xf32>
    %208 = arith.mulf %206, %207 : vector<8x32xf32>
    %209 = vector.broadcast %12 : vector<1x32xf32> to vector<8x32xf32>
    %210 = arith.addf %208, %209 : vector<8x32xf32>
    %211 = vector.broadcast %14 : vector<1x32xf32> to vector<8x32xf32>
    %212 = arith.mulf %211, %210 : vector<8x32xf32>
    %213 = arith.addf %148, %212 : vector<8x32xf32>
    %214 = vector.shape_cast %213 : vector<8x32xf32> to vector<1x8x32xf32>
    %c0_82 = arith.constant 0 : index
    %c0_83 = arith.constant 0 : index
    %c0_84 = arith.constant 0 : index
    %215 = vector.load %arg16[%c0_82, %c0_83, %c0_84] : memref<1x8x32xf32, #tpu.memory_space<vmem>>, vector<1x8x32xf32>
    tpu.vector_store %arg16[%c0_82, %c0_83, %c0_84], %214 {strides = array<i32>} : memref<1x8x32xf32, #tpu.memory_space<vmem>>, vector<1x8x32xf32>,
    return
  }
  func.func @transform_0(%arg0: i32, %arg1: i32) -> (i32, i32, i32) {
    %c0_i32 = arith.constant 0 : i32
    %c0_i32_0 = arith.constant 0 : i32
    %c0_i32_1 = arith.constant 0 : i32
    return %arg0, %c0_i32, %c0_i32_0 : i32, i32, i32
  }
  func.func @transform_1(%arg0: i32, %arg1: i32) -> (i32, i32, i32) {
    %c0_i32 = arith.constant 0 : i32
    %c0_i32_0 = arith.constant 0 : i32
    %c0_i32_1 = arith.constant 0 : i32
    return %arg1, %c0_i32, %c0_i32_0 : i32, i32, i32
  }
  func.func @transform_2(%arg0: i32, %arg1: i32) -> (i32, i32, i32) {
    %c0_i32 = arith.constant 0 : i32
    %c0_i32_0 = arith.constant 0 : i32
    %c0_i32_1 = arith.constant 0 : i32
    return %arg1, %c0_i32, %c0_i32_0 : i32, i32, i32
  }
  func.func @transform_3(%arg0: i32, %arg1: i32) -> (i32, i32, i32) {
    %c0_i32 = arith.constant 0 : i32
    %c0_i32_0 = arith.constant 0 : i32
    %c0_i32_1 = arith.constant 0 : i32
    return %arg1, %c0_i32, %c0_i32_0 : i32, i32, i32
  }
  func.func @transform_4(%arg0: i32, %arg1: i32) -> (i32, i32, i32) {
    %c0_i32 = arith.constant 0 : i32
    %c0_i32_0 = arith.constant 0 : i32
    %c0_i32_1 = arith.constant 0 : i32
    return %arg1, %c0_i32, %c0_i32_0 : i32, i32, i32
  }
  func.func @transform_5(%arg0: i32, %arg1: i32) -> (i32, i32, i32) {
    %c0_i32 = arith.constant 0 : i32
    %c0_i32_0 = arith.constant 0 : i32
    %c0_i32_1 = arith.constant 0 : i32
    return %arg1, %c0_i32, %c0_i32_0 : i32, i32, i32
  }
  func.func @transform_6(%arg0: i32, %arg1: i32) -> (i32, i32, i32) {
    %c0_i32 = arith.constant 0 : i32
    %c0_i32_0 = arith.constant 0 : i32
    %c0_i32_1 = arith.constant 0 : i32
    return %arg1, %c0_i32, %c0_i32_0 : i32, i32, i32
  }
  func.func @transform_7(%arg0: i32, %arg1: i32) -> (i32, i32, i32) {
    %c0_i32 = arith.constant 0 : i32
    %c0_i32_0 = arith.constant 0 : i32
    %c0_i32_1 = arith.constant 0 : i32
    return %arg1, %c0_i32, %c0_i32_0 : i32, i32, i32
  }
  func.func @transform_8(%arg0: i32, %arg1: i32) -> (i32, i32, i32) {
    %c0_i32 = arith.constant 0 : i32
    %c0_i32_0 = arith.constant 0 : i32
    %c0_i32_1 = arith.constant 0 : i32
    return %arg1, %c0_i32, %c0_i32_0 : i32, i32, i32
  }
  func.func @transform_9(%arg0: i32, %arg1: i32) -> (i32, i32, i32) {
    %c0_i32 = arith.constant 0 : i32
    %c0_i32_0 = arith.constant 0 : i32
    %c0_i32_1 = arith.constant 0 : i32
    return %arg1, %c0_i32, %c0_i32_0 : i32, i32, i32
  }
  func.func @transform_10(%arg0: i32, %arg1: i32) -> (i32, i32, i32) {
    %c0_i32 = arith.constant 0 : i32
    %c0_i32_0 = arith.constant 0 : i32
    %c0_i32_1 = arith.constant 0 : i32
    return %arg1, %c0_i32, %c0_i32_0 : i32, i32, i32
  }
  func.func @transform_11(%arg0: i32, %arg1: i32) -> (i32, i32, i32) {
    %c0_i32 = arith.constant 0 : i32
    %c0_i32_0 = arith.constant 0 : i32
    %c0_i32_1 = arith.constant 0 : i32
    return %arg1, %c0_i32, %c0_i32_0 : i32, i32, i32
  }
  func.func @transform_12(%arg0: i32, %arg1: i32) -> (i32, i32, i32) {
    %c0_i32 = arith.constant 0 : i32
    %c0_i32_0 = arith.constant 0 : i32
    %c0_i32_1 = arith.constant 0 : i32
    return %arg1, %c0_i32, %c0_i32_0 : i32, i32, i32
  }
  func.func @transform_13(%arg0: i32, %arg1: i32) -> (i32, i32, i32) {
    %c0_i32 = arith.constant 0 : i32
    %c0_i32_0 = arith.constant 0 : i32
    %c0_i32_1 = arith.constant 0 : i32
    return %arg1, %c0_i32, %c0_i32_0 : i32, i32, i32
  }
  func.func @transform_14(%arg0: i32, %arg1: i32) -> (i32, i32, i32) {
    %c0_i32 = arith.constant 0 : i32
    %c0_i32_0 = arith.constant 0 : i32
    %c0_i32_1 = arith.constant 0 : i32
    return %arg0, %c0_i32, %c0_i32_0 : i32, i32, i32
  }
}

</mosaic_0001>

<bundles_post_ra>
// kernel: tpu_custom_call.1
= control target key start
LH: loop header
LB: loop body
LE: loop exit
PB: predicated region body
PF: predicated region fallthrough
CT: control target
= control target key end

     0   :  { %s2905_s0 = inlined_call_operand.hbm [shape: f32[2,8,32], index: 0, kind: input, shape index: {}]   ;;  %s2906_s1 = inlined_call_operand.hbm [shape: f32[2,8,96], index: 1, kind: input, shape index: {}]   ;;  %s2907_s2 = inlined_call_operand.vmem [shape: bf16[2,32,96], index: 2, kind: input, shape index: {}]   ;;  %s2908_s3 = inlined_call_operand.vmem [shape: bf16[2,32,32], index: 3, kind: input, shape index: {}]   ;;  %s2909_s4 = inlined_call_operand.vmem [shape: f32[2,1,32], index: 4, kind: input, shape index: {}]   ;;  %s2910_s5 = inlined_call_operand.vmem [shape: bf16[2,32,64], index: 5, kind: input, shape index: {}]   ;;  %s2911_s6 = inlined_call_operand.vmem [shape: f32[2,1,64], index: 6, kind: input, shape index: {}]   ;;  %s2912_s7 = inlined_call_operand.vmem [shape: bf16[2,64,32], index: 7, kind: input, shape index: {}]   ;;  %s2913_s8 = inlined_call_operand.vmem [shape: f32[2,1,32], index: 8, kind: input, shape index: {}]   ;;  %s2914_s9 = inlined_call_operand.vmem [shape: f32[2,1,32], index: 9, kind: input, shape index: {}]   ;;  %s2915_s10 = inlined_call_operand.vmem [shape: f32[2,1,32], index: 10, kind: input, shape index: {}]   ;;  %s2916_s11 = inlined_call_operand.vmem [shape: f32[2,1,32], index: 11, kind: input, shape index: {}]   ;;  %s2917_s12 = inlined_call_operand.vmem [shape: f32[2,1,32], index: 12, kind: input, shape index: {}]   ;;  %s2918_s13 = inlined_call_operand.vmem [shape: f32[2,1,32], index: 13, kind: input, shape index: {}]   ;;  %s2919_s14 = inlined_call_operand.hbm [shape: f32[2,8,32], index: 14, kind: output, shape index: {}]  }
   0x1   :  { %2939 = sst [smem:[#allocation27_spill]] %s2905_s0 }
   0x2   :  { %2940 = sst [smem:[#allocation28_spill]] %s2906_s1 }
   0x3   :  { %2941 = sst [smem:[#allocation29_spill]] %s2907_s2 }
   0x4   :  { %2942 = sst [smem:[#allocation30_spill]] %s2908_s3 }
   0x5   :  { %2943 = sst [smem:[#allocation31_spill]] %s2910_s5 }
   0x6   :  { %2944 = sst [smem:[#allocation32_spill]] %s2911_s6 }
   0x7   :  { %2945 = sst [smem:[#allocation33_spill]] %s2912_s7 }
   0x8   :  { %2946 = sst [smem:[#allocation34_spill]] %s2913_s8 }
   0x9   :  { %2947 = sst [smem:[#allocation35_spill]] %s2914_s9 }
   0xa   :  { %2948 = sst [smem:[#allocation36_spill]] %s2915_s10 }
   0xb   :  { %2949 = sst [smem:[#allocation37_spill]] %s2916_s11 }
   0xc   :  { %2950 = sst [smem:[#allocation38_spill]] %s2917_s12 }
   0xd   :  { %2951 = sst [smem:[#allocation39_spill]] %s2918_s13 }
   0xe   :  { %2952 = sst [smem:[#allocation40_spill]] %s2919_s14 }
   0xf   :  { %19 = vsyncpa [#allocation3], 0 }
  0x10   :  { %21 = vsyncpa [#allocation3 + $0x1], 0 }
  0x11   :  { %22 = vsyncpa [#allocation6], 0 }
  0x12   :  { %24 = vsyncpa [#allocation6 + $0x1], 0 }
  0x13   :  { %25 = vsyncpa [#allocation4], 0 }
  0x14   :  { %27 = vsyncpa [#allocation4 + $0x1], 0  ;;  %s2422_s29 = smov 0   ;;  %s2424_s30 = smov 0  }
  0x15   :  { %s2426_s15 = smov 0   ;;  %s2428_s16 = smov 0  }
  0x16   :  { %s2430_s17 = smov 0   ;;  %s2432_s18 = smov 0  }
  0x17   :  { %s2434_s19 = smov 0   ;;  %s2436_s20 = smov 0  }
  0x18   :  { %s2438_s21 = smov 0   ;;  %s2440_s22 = smov 0  }
  0x19   :  { %s2442_s23 = smov 0  }
  0x1a LB: > { %2953 = sst [smem:[#allocation11_spill]] %s2290_s30  ;;  %s1816_s24 = sadd.s32 4294967295, %s2326_s23   ;;  %s2326_s23 = sphi %s2442_s23, %s33_s23   ;;  %s2322_s22 = sphi %s2440_s22, %s3026_s22   ;;  %s2318_s21 = sphi %s2438_s21, %s3025_s21   ;;  %s2314_s20 = sphi %s2436_s20, %s3024_s20   ;;  %s2310_s19 = sphi %s2434_s19, %s3023_s19   ;;  %s2306_s18 = sphi %s2432_s18, %s3022_s18   ;;  %s2302_s17 = sphi %s2430_s17, %s3021_s17   ;;  %s2298_s16 = sphi %s2428_s16, %s3020_s16   ;;  %s2294_s15 = sphi %s2426_s15, %s3019_s15   ;;  %s2290_s30 = sphi %s2424_s30, %s3018_s30   ;;  %s2286_s29 = sphi %s2422_s29, %s3017_s29  }
  0x1b   : > { %2954 = sst [smem:[#allocation12_spill]] %s2294_s15  ;;  %s1817_s25 = sadd.s32 4294967294, %s2326_s23  }
  0x1c   : > { %2955 = sst [smem:[#allocation13_spill]] %s2298_s16  ;;  %p59_p0 = scmp.ne.s32.totalorder %s2306_s18, %s2302_s17 }
  0x1d   : > { %2956 = sst [smem:[#allocation14_spill]] %s2302_s17  ;;  %p2925_p1 = scmp.eq.s32.totalorder %s2326_s23, 0 }
  0x1e   : > { %2957 = sst [smem:[#allocation15_spill]] %s2306_s18  ;;  %p65_p2 = scmp.ne.s32.totalorder %s2302_s17, %s2298_s16 }
  0x1f   : > { %2958 = sst [smem:[#allocation16_spill]] %s2314_s20  ;;  %p2486_p3 = scmp.eq.s32.totalorder %s1816_s24, 0 }
  0x20   : > { %2959 = sst [smem:[#allocation17_spill]] %s2318_s21  ;;  %p2492_p4 = por %p2925_p1, %p59_p0 }
  0x21   : > { %2960 = sst [smem:[#allocation18_spill]] %s2322_s22  ;;  %p427_p5 = scmp.eq.s32.totalorder %s1816_s24, 3 }
  0x22   : > { %2961 = sst [smem:[#allocation19_spill]] %s2326_s23  ;;  %p2498_p6 = por %p2486_p3, %p65_p2 }
  0x23   : > { %p433_p7 = scmp.eq.s32.totalorder %s1817_s25, 3  ;;  %p2502_p8 = por %p427_p5, %p59_p0 }
  0x24   : > { %p2926_p10 = scmp.lt.s32.totalorder %s2326_s23, 4  ;;  %s453_s20 = sand.u32 1, %s2306_s18  }
  0x25   : > { %s2965_s26 = scalar_select %p2502_p8, 1, 0 }
  0x26   : > { %p2506_p9 = por %p433_p7, %p65_p2  ;;  %s1821_s13 = sshll.u32 %s2322_s22, 7 }
  0x27   : > { %2966 = sst [smem:[#allocation20_spill]] %s2965_s26  ;;  %s1820_s12 = sshll.u32 %s453_s20, 3 }
  0x28   : > { %s2967_s16 = scalar_select %p2506_p9, 1, 0 }
  0x29   : > { %s2969_s0 = sld [smem:[#allocation27_spill]]  ;;  %s457_s9 = scalar_lea.vmem [#allocation2], %s1820_s12 }
  0x2a   : > { %2968 = sst [smem:[#allocation21_spill]] %s2967_s16  ;;  %s464_s7 = sshll.u32 %s457_s9, 4  ;;  %s465_s7 = int_to_ptr.vmem [resolvable:$true] %s464_s7 }
  0x2b   : > { %p2520_p11 = pnand %p2926_p10, %p2492_p4  ;;  %p1824_p12 = scmp.ge.s32.totalorder %s2326_s23, 1 }
  0x2c   : > { %p567_p13 = scmp.lt.s32.totalorder %s2326_s23, 5  ;;  %s454_s16 = scalar_lea.sflag [#allocation3], %s453_s20 }
  0x2d   : > { %p2148_p0 = pneg %p2520_p11  ;;  %s2159_s26 = scalar_lea.vmem %s465_s7, 128 }
  0x2e   : > { %p2160_p2 = scmp.ne.s32.totalorder %s465_s7, %s2159_s26  ;;  %s2328_s11 = smov [#allocation2]  }
  0x2f   : > { %s462_s10 = scalar_lea.hbm %s2969_s0, %s1821_s13  ;;  %s2164_s12 = sshll.u32 %s2328_s11, 4  ;;  %s2165_s12 = int_to_ptr.vmem [resolvable:$false] %s2164_s12 }
  0x30   : > { %p2162_p5 = pnand %p2160_p2, %p2148_p0  ;;  %s2166_s9 = scalar_lea.vmem %s2165_s12, 256 }
  0x31   : > { %p2167_p1 = scmp.lt.s32.totalorder %s465_s7, %s2165_s12  ;;  %p2168_p4 = scmp.lt.s32.totalorder %s2166_s9, %s2159_s26 }
  0x32   : > { %p2163_p7 = pneg %p2162_p5 }
  0x33   : > { %p2169_p10 = por %p2168_p4, %p2167_p1 }
  0x35   : > { %p2170_p9 = pnand %p2169_p10, %p2163_p7 }
  0x37   : > { %2173 = shalt.err (!%p2170_p9)
}
  0x38   : > { %1998 = dma.hbm_to_vmem [thread:$0]  (!%p2520_p11), %s462_s10, 128, %s465_s7, %s454_s16  }
  0x39   : > { %p2534_p1 = pnand %p1824_p12, %p567_p13  ;;  %s42_s14 = sadd.s32 1, %s2318_s21 }
  0x3a   : > { %p43_p9 = scmp.ge.s32.totalorder %s42_s14, 2  ;;  %s78_s20 = sadd.s32 1, %s2294_s15 }
  0x3b   : > { %p85_p10 = scmp.ne.s32.totalorder %s2294_s15, %s2290_s30  ;;  %p91_p0 = scmp.ne.s32.totalorder %s2290_s30, %s2286_s29 }
  0x3c   : > { %s3028_s14 = smov (%p43_p9, %s42_s14), 0  ;;  %s2973_s26 = sadd.s32 1, %s2322_s22 }
  0x3d   : > { %2972 = sst [smem:[#allocation22_spill]] %s3028_s14  ;;  %s3030_s26 = smov (!%p43_p9, %s2973_s26), %s2322_s22 }
  0x3e   : > { %s75_s7 = ssub.s32 %s2318_s21, %s3028_s14  ;;  %p2974_p11 = scmp.eq.s32.totalorder %s2326_s23, 0 }
  0x3f   : > { %p47_p13 = scmp.ge.s32.totalorder %s3030_s26, 2  ;;  %p76_p2 = scmp.eq.s32.totalorder %s75_s7, 0 }
  0x40   : > { %p2553_p12 = por %p85_p10, %p2974_p11  ;;  %p2559_p5 = por %p91_p0, %p2486_p3 }
  0x41   : > { %s471_s29 = sand.u32 1, %s2294_s15   ;;  %s3032_s26 = smov (%p47_p13, %s3030_s26), 0 }
  0x42   : > { %2977 = sst [smem:[#allocation23_spill]] %s3032_s26  ;;  %s49_s25 = ssub.s32 %s2322_s22, %s3032_s26 }
  0x43   : > { %s2567_s24 = scalar_select %p76_p2, %s2294_s15, %s78_s20  }
  0x44   : > { %p50_p7 = scmp.eq.s32.totalorder %s49_s25, 0  ;;  %s1822_s11 = sshll.u32 %s471_s29, 3 }
  0x45   : > { %2978 = sst [smem:[#allocation24_spill]] %s2567_s24  ;;  %s1823_s12 = sshll.u32 %s2318_s21, 7 }
  0x46   : > { %s2979_s9 = sadd.s32 1, %s2306_s18  ;;  %s2981_s1 = sld [smem:[#allocation28_spill]] }
  0x47   : > { %s2575_s0 = scalar_select %p50_p7, %s2306_s18, %s2979_s9  }
  0x48   : > { %s475_s8 = scalar_lea.vmem [#allocation5], %s1822_s11  ;;  %p2982_p3 = scmp.lt.s32.totalorder %s2326_s23, 4 }
  0x49   : > { %2980 = sst [smem:[#allocation25_spill]] %s2575_s0  ;;  %s482_s6 = sshll.u32 %s475_s8, 4  ;;  %s483_s6 = int_to_ptr.vmem [resolvable:$true] %s482_s6 }
  0x4a   : > { %p2584_p4 = pnand %p2982_p3, %p2553_p12  ;;  %s472_s20 = scalar_lea.sflag [#allocation6], %s471_s29 }
  0x4b   : > { %s2187_s25 = scalar_lea.vmem %s483_s6, 128  ;;  %s2329_s9 = smov [#allocation5]  }
  0x4c   : > { %s480_s28 = scalar_lea.hbm %s2981_s1, %s1823_s12  ;;  %p2176_p9 = pneg %p2584_p4 }
  0x4d   : > { %p2188_p10 = scmp.ne.s32.totalorder %s483_s6, %s2187_s25  ;;  %s2192_s14 = sshll.u32 %s2329_s9, 4  ;;  %s2193_s14 = int_to_ptr.vmem [resolvable:$false] %s2192_s14 }
  0x4e   : > { %s2194_s11 = scalar_lea.vmem %s2193_s14, 256  ;;  %p2195_p13 = scmp.lt.s32.totalorder %s483_s6, %s2193_s14 }
  0x4f   : > { %p2190_p0 = pnand %p2188_p10, %p2176_p9  ;;  %p2196_p2 = scmp.lt.s32.totalorder %s2194_s11, %s2187_s25 }
  0x51   : > { %p2191_p11 = pneg %p2190_p0  ;;  %p2197_p7 = por %p2196_p2, %p2195_p13 }
  0x53   : > { %p2198_p8 = pnand %p2197_p7, %p2191_p11 }
  0x55   : > { %2201 = shalt.err (!%p2198_p8)
}
  0x56   : > { %2001 = dma.hbm_to_vmem [thread:$0]  (!%p2584_p4), %s480_s28, 128, %s483_s6, %s472_s20  }
  0x57   : > { %571 = sbr.rel (%p2534_p1) target bundleno = 3171 (0xc63), region = 76 }
  0x5c   : > { %s2595_s8 = sand.u32 1, %s2302_s17  }
  0x5d   : > { %2984 = sst [smem:[#allocation26_spill]] %s2595_s8  ;;  %s1825_s10 = sshll.u32 %s2595_s8, 3 }
  0x5e   : > { %s574_s29 = scalar_lea.sflag [#allocation3], %s2595_s8  ;;  %s577_s12 = scalar_lea.vmem [#allocation2], %s1825_s10 }
  0x5f   : > { %2273 = dma.done.wait (%p2498_p6), %s574_s29, 128  }
  0x60   : > { %2275 = vsyncadd (%p2498_p6), %s574_s29, 4294967168  ;;  %s582_s5 = sand.u32 1, %s2290_s30  }
  0x61   : > { %s2604_s6 = sshll.u32 %s582_s5, 3  ;;  %s583_s13 = scalar_lea.sflag [#allocation6], %s582_s5 }
  0x62   : > { %2277 = dma.done.wait (%p2559_p5), %s583_s13, 128  }
  0x63   : > { %2279 = vsyncadd (%p2559_p5), %s583_s13, 4294967168  ;;  %p680_p8 = scmp.lt.s32.totalorder %s2310_s19, 1  ;;  %s2985_s2 = sld [smem:[#allocation29_spill]] }
  0x64   : > { %s2986_s3 = sld [smem:[#allocation30_spill]]  ;;  %p1836_p6 = scmp.ne.s32.totalorder %s2310_s19, 0 }
  0x65   : > { %s2613_s28 = scalar_select %p680_p8, %s2310_s19, 1 }
  0x66   : > { %s2987_s26 = sld [smem:[#allocation31_spill]] }
  0x67   : > { %s1871_s27 = sshll.u32 %s2613_s28, 4  ;;  %s1874_s25 = sshll.u32 %s2613_s28, 5 }
  0x68   : > { %s2990_s15 = sld [smem:[#allocation33_spill]] }
  0x69   : > { %s2623_s11 = scalar_lea.vmem %s2985_s2, %s1871_s27  ;;  %s2991_s30 = sld [smem:[#allocation35_spill]] }
  0x6a   : > { %s2628_s13 = scalar_lea.vmem %s2986_s3, %s1871_s27  ;;  %s2993_s21 = sld [smem:[#allocation37_spill]] }
  0x6b   : > { %s2994_s16 = sld [smem:[#allocation38_spill]] }
  0x6c   : > { %s2633_s22 = scalar_lea.vmem %s2987_s26, %s1871_s27  ;;  %s2992_s27 = sld [smem:[#allocation36_spill]] }
  0x6e   : > { %s2647_s29 = scalar_lea.vmem %s2990_s15, %s1874_s25  ;;  %s2995_s15 = sld [smem:[#allocation39_spill]] }
  0x6f   : > { %s711_s1 = scalar_lea.vmem %s2991_s30, %s2613_s28  ;;  %s2669_s25 = scalar_lea.vmem [#allocation7], %s1825_s10 }
  0x70   : > { %s717_s20 = scalar_lea.vmem %s2993_s21, %s2613_s28  ;;  %728 = sbr.rel (%p1836_p6) target bundleno = 119 (0x77), region = 88 }
  0x71   : > { %s720_s9 = scalar_lea.vmem %s2994_s16, %s2613_s28 }
  0x72   : > { %s714_s23 = scalar_lea.vmem %s2992_s27, %s2613_s28 }
  0x74   : > { %s723_s24 = scalar_lea.vmem %s2995_s15, %s2613_s28 }
  0x75   : > { %v729_v0 = vld [vmem:[%s577_s12] sm:$0xff]  ;;  %vm730_vm0 = vcmask 261120  }
  0x76   : > { %731 = vst.msk [vmem:[%s2669_s25] sm:$0xff] %vm730_vm0, %v729_v0 }
  0x77 PF: > { %vm738_vm1 = vcmask 261120   ;;  %v2112_v8 = vld [vmem:[%s2623_s11 + $0x8] sm:$0xff]   ;;  %v2330_v9 = vmov 0.0   ;;  %vm2331_vm2 = vmmov 0   ;;  %v2113_v10 = vld [vmem:[%s2623_s11] sm:$0xff]   ;;  %s2998_s11 = scalar_lea.vmem [#allocation5], %s2604_s6  ;;  %s2999_s3 = scalar_lea.vmem %s2909_s4, %s2613_s28 }
  0x78   : > { %1905 = vmatprep.subr.bf16.mxu0 %v2330_v9  ;;  %1909 = vmatprep.mubr.msk.bf16.mxu0 %vm2331_vm2, %v2330_v9  ;;  %v2695_v15 = vld [vmem:[%s711_s1] ss:$0 sm:$0xff]  ;;  %v827_v21 = vld [vmem:[%s2998_s11] sm:$0xff]  ;;  %s2333_s14 = smov 96   ;;  %s2334_s5 = smov 88   ;;  %vm833_vm3 = vcmask 64512  }
  0x79   : > { %1906 = vmatpush3.bf16.msra.mxu0 %v2112_v8  ;;  %1913 = vmatprep.subr.bf16.mxu1 %v2330_v9  ;;  %v2702_v17 = vld [vmem:[%s714_s23] ss:$0 sm:$0xff]  ;;  %s2332_s23 = smov 120   ;;  %s2335_s1 = smov 80   ;;  %vm897_vm4 = vcmask 1043456   ;;  %vm1287_vm5 = vcmask 130048  }
  0x7a   : > { %1907 = vmatprep.subr.bf16.mxu0 %v2330_v9  ;;  %1915 = vmatprep.mubr.msk.bf16.mxu1 %vm2331_vm2, %v2330_v9  ;;  %s2336_s6 = smov 112   ;;  %s2337_s26 = smov 72   ;;  %vm1290_vm6 = vcmask 195584   ;;  %vm1516_vm7 = vcmask 523264  }
  0x7b   : > { %s2338_s7 = smov 104   ;;  %s2339_s27 = smov 64  }
  0x7c   : > { %s2340_s0 = smov 56   ;;  %s2341_s18 = smov 48  }
  0x7d   : > { %v2674_v1 = vld [vmem:[%s2669_s25] sm:$0xff]  ;;  %1908 = vmatpush3.bf16.msra.mxu0 %v2113_v10  ;;  %s2342_s21 = smov 40   ;;  %s2343_s17 = smov 8  }
  0x7e   : > { %v739_v2 = vsel %vm738_vm1, %v2674_v1, 0.0  ;;  %1919 = vmatprep.subr.bf16.mxu0 %v2330_v9  ;;  %s2344_s16 = smov 16   ;;  %s2345_s2 = smov 24  }
  0x7f   : > { %740 = vadd.xlane.f32.xlu0 %v739_v2  ;;  %s2346_s30 = smov [#allocation7]  }
  0x80   : > { %s2206_s19 = sshll.u32 %s2346_s30, 4  ;;  %s2207_s19 = int_to_ptr.vmem [resolvable:$false] %s2206_s19 }
  0x81   : > { %s2208_s8 = scalar_lea.vmem %s2207_s19, 256 }
 0x108   : > { %v741_v3 = vpop.xlane.xlu0 %740 }
 0x109   : > { %v743_v4 = vmul.f32 0.03125, %v741_v3 }
 0x10b   : > { %v744_v5 = vsub.f32 %v2674_v1, %v743_v4 }
 0x10d   : > { %v745_v6 = vmul.f32 %v744_v5, %v744_v5 }
 0x10f   : > { %v746_v7 = vsel %vm738_vm1, %v745_v6, 0.0 }
 0x110   : > { %747 = vadd.xlane.f32.xlu0 %v746_v7 }
 0x199   : > { %v748_v11 = vpop.xlane.xlu0 %747 }
 0x19a   : > { %v749_v12 = vmul.f32 0.03125, %v748_v11 }
 0x19c   : > { %v750_v13 = vadd.f32 1e-05, %v749_v12 }
 0x19e   : > { %2122 = vrsqrt.f32 %v750_v13 }
 0x1ab   : > { %v2123_v14 = vpop.eup %2122 }
 0x1ac   : > { %v752_v16 = vmul.f32 %v2123_v14, %v744_v5 }
 0x1ae   : > { %v759_v18 = vmul.f32 %v2695_v15, %v752_v16 }
 0x1b0   : > { %v766_v19 = vadd.f32 %v2702_v17, %v759_v18 }
 0x1b2   : > { %v767_v20 = vpack.c.bf16 %v766_v19, %v766_v19 }
 0x1b4   : > { %1910 = vmatmul.mubr.msk.bf16.vlgmr.msra.gmra.mxu0 %vm738_vm1, %v767_v20 }
 0x1b5   : > { %1921 = vmatprep.mubr.msk.bf16.mxu0 %vm2331_vm2, %v2330_v9 }
 0x274   : > { %v821_v22 = vpop.f32.mrf.mxu0 }
 0x275   : > { %v828_v23 = vadd.f32 %v827_v21, %v821_v22 }
 0x276   : > { %v1911_v24 = vpop.f32.mrf.mxu0 }
 0x277   : > { %v2711_v25 = vpack.c.bf16 %v828_v23, %v828_v23 }
 0x278   : > { %v824_v26 = vpop.f32.mrf.mxu0 }
 0x279   : > { %942 = vrot.lane.b32.xlu0 %v2711_v25, %s2332_s23  ;;  %831 = vrot.lane.b32.xlu1 %v2711_v25, %s2333_s14 }
 0x27a   : > { %v1912_v27 = vpop.f32.mrf.mxu0 }
 0x27d   : > { %944 = vrot.lane.b32.xlu1 %v2711_v25, %s2334_s5 }
 0x281   : > { %1055 = vrot.lane.b32.xlu1 %v2711_v25, %s2335_s1 }
 0x285   : > { %1053 = vrot.lane.b32.xlu1 %v2711_v25, %s2336_s6 }
 0x289   : > { %1166 = vrot.lane.b32.xlu1 %v2711_v25, %s2337_s26  ;;  %s3005_s26 = sld [smem:[#allocation34_spill]] }
 0x28d   : > { %1164 = vrot.lane.b32.xlu1 %v2711_v25, %s2338_s7 }
 0x28f   : > { %s3006_s7 = scalar_lea.vmem %s3005_s26, %s2613_s28 }
 0x2eb   : > { %v832_v28 = vpop.permute.xlu1 %831  ;;  %v943_v33 = vpop.permute.xlu0 %942 }
 0x2ec   : > { %v838_v29 = vsel %vm833_vm3, %v832_v28, 0 }
 0x2ed   : > { %1914 = vmatpush3.bf16.xpose.msra.mxu1 %v838_v29 }
 0x2ee   : > { %1925 = vmatprep.subr.bf16.mxu1 %v2330_v9 }
 0x2ef   : > { %v945_v30 = vpop.permute.xlu1 %944 }
 0x2f0   : > { %v950_v31 = vsel %vm833_vm3, %v945_v30, 0 }
 0x2f3   : > { %v1056_v32 = vpop.permute.xlu1 %1055 }
 0x2f4   : > { %1916 = vmatmul.mubr.msk.bf16.vlgmr.msra.gmra.mxu1 %vm833_vm3, %v2711_v25  ;;  %v1061_v35 = vsel %vm833_vm3, %v1056_v32, 0 }
 0x2f5   : > { %1926 = vmatpush3.bf16.xpose.msra.mxu1 %v950_v31  ;;  %1927 = vmatprep.mubr.msk.bf16.mxu1 %vm2331_vm2, %v2330_v9 }
 0x2f6   : > { %1937 = vmatprep.subr.bf16.mxu1 %v2330_v9 }
 0x2f7   : > { %v1054_v34 = vpop.permute.xlu1 %1053 }
 0x2fb   : > { %v1167_v36 = vpop.permute.xlu1 %1166 }
 0x2fc   : > { %1928 = vmatmul.mubr.msk.bf16.vlgmr.msra.gmra.mxu1 %vm833_vm3, %v943_v33  ;;  %v1172_v37 = vsel %vm833_vm3, %v1167_v36, 0 }
 0x2fd   : > { %1938 = vmatpush3.bf16.xpose.msra.mxu1 %v1061_v35  ;;  %1939 = vmatprep.mubr.msk.bf16.mxu1 %vm2331_vm2, %v2330_v9 }
 0x2fe   : > { %1949 = vmatprep.subr.bf16.mxu1 %v2330_v9 }
 0x2ff   : > { %v1165_v38 = vpop.permute.xlu1 %1164 }
 0x304   : > { %1940 = vmatmul.mubr.msk.bf16.vlgmr.msra.gmra.mxu1 %vm833_vm3, %v1054_v34 }
 0x305   : > { %1950 = vmatpush3.bf16.xpose.msra.mxu1 %v1172_v37  ;;  %1951 = vmatprep.mubr.msk.bf16.mxu1 %vm2331_vm2, %v2330_v9 }
 0x306   : > { %1961 = vmatprep.subr.bf16.mxu1 %v2330_v9 }
 0x30c   : > { %1952 = vmatmul.mubr.msk.bf16.vlgmr.msra.gmra.mxu1 %vm833_vm3, %v1165_v38 }
 0x30d   : > { %1965 = vmatprep.mubr.msk.bf16.mxu1 %vm2331_vm2, %v2330_v9 }
 0x3b4   : > { %v874_v39 = vpop.f32.mrf.mxu1 }
 0x3b5   : > { %v880_v40 = vsel %vm833_vm3, %v874_v39, -inf }
 0x3b6   : > { %881 = vmax.xlane.f32.xlu1 %v880_v40  ;;  %v1917_v41 = vpop.f32.mrf.mxu1 }
 0x3b8   : > { %v877_v42 = vpop.f32.mrf.mxu1 }
 0x3ba   : > { %v1918_v43 = vpop.f32.mrf.mxu1 }
 0x3bc   : > { %v986_v44 = vpop.f32.mrf.mxu1 }
 0x3bd   : > { %v992_v45 = vsel %vm833_vm3, %v986_v44, -inf }
 0x3be   : > { %993 = vmax.xlane.f32.xlu0 %v992_v45  ;;  %v1929_v46 = vpop.f32.mrf.mxu1 }
 0x3c0   : > { %v989_v47 = vpop.f32.mrf.mxu1 }
 0x3c2   : > { %v1930_v48 = vpop.f32.mrf.mxu1 }
 0x3c4   : > { %v1097_v49 = vpop.f32.mrf.mxu1 }
 0x3c5   : > { %v1103_v50 = vsel %vm833_vm3, %v1097_v49, -inf }
 0x3c6   : > { %1104 = vmax.xlane.f32.xlu1 %v1103_v50  ;;  %v1941_v51 = vpop.f32.mrf.mxu1 }
 0x3c8   : > { %v1100_v52 = vpop.f32.mrf.mxu1 }
 0x3c9   : > { %v2114_v52 = vld [vmem:[%s2628_s13 + $0x8] sm:$0xff]  }
 0x3ca   : > { %v1942_v53 = vpop.f32.mrf.mxu1  ;;  %1962 = vmatpush3.bf16.msra.mxu1 %v2114_v52  ;;  %v2120_v52 = vld [vmem:[%s2647_s29 + $0x8] sm:$0xff]  }
 0x3cb   : > { %v2115_v53 = vld [vmem:[%s2628_s13] sm:$0xff]   ;;  %1963 = vmatprep.subr.bf16.mxu1 %v2330_v9 }
 0x3cc   : > { %v1208_v54 = vpop.f32.mrf.mxu1 }
 0x3cd   : > { %v1214_v55 = vsel %vm833_vm3, %v1208_v54, -inf }
 0x3ce   : > { %1215 = vmax.xlane.f32.xlu0 %v1214_v55  ;;  %v1953_v56 = vpop.f32.mrf.mxu1  ;;  %1964 = vmatpush3.bf16.msra.mxu1 %v2115_v53  ;;  %v2121_v53 = vld [vmem:[%s2647_s29] sm:$0xff]  }
 0x3cf   : > { %1977 = vmatprep.subr.bf16.mxu1 %v2330_v9 }
 0x3d0   : > { %v1211_v57 = vpop.f32.mrf.mxu1 }
 0x3d2   : > { %v1954_v58 = vpop.f32.mrf.mxu1 }
 0x43f   : > { %v882_v59 = vpop.xlane.xlu1 %881 }
 0x440   : > { %v883_v60 = vsub.f32 %v874_v39, %v882_v59 }
 0x442   : > { %v884_v61 = vmul.f32 1.442695, %v883_v60 }
 0x444   : > { %2124 = vpow2.f32 %v884_v61 }
 0x447   : > { %v994_v62 = vpop.xlane.xlu0 %993 }
 0x448   : > { %v995_v63 = vsub.f32 %v986_v44, %v994_v62 }
 0x44a   : > { %v996_v0 = vmul.f32 1.442695, %v995_v63 }
 0x44c   : > { %2126 = vpow2.f32 %v996_v0 }
 0x44f   : > { %v1105_v12 = vpop.xlane.xlu1 %1104 }
 0x450   : > { %v1106_v13 = vsub.f32 %v1097_v49, %v1105_v12 }
 0x451   : > { %v2125_v2 = vpop.eup %2124 }
 0x452   : > { %v886_v3 = vsel %vm833_vm3, %v2125_v2, 0.0  ;;  %v1107_v14 = vmul.f32 1.442695, %v1106_v13 }
 0x453   : > { %887 = vadd.xlane.f32.xlu1 %v886_v3 }
 0x457   : > { %v1216_v4 = vpop.xlane.xlu0 %1215 }
 0x458   : > { %v1217_v5 = vsub.f32 %v1208_v54, %v1216_v4 }
 0x459   : > { %v2127_v6 = vpop.eup %2126 }
 0x45a   : > { %v1218_v7 = vmul.f32 1.442695, %v1217_v5  ;;  %v998_v8 = vsel %vm833_vm3, %v2127_v6, 0.0 }
 0x45b   : > { %999 = vadd.xlane.f32.xlu0 %v998_v8  ;;  %v1850_v8 = vld [vmem:[%s2999_s3] ss:$0 sm:$0xff] }
 0x45c   : > { %2128 = vpow2.f32 %v1218_v7 }
 0x45d   : > { %2130 = vpow2.f32 %v1107_v14 }
 0x464   : > { %892 = vrot.lane.b32.xlu1 %v2711_v25, %s2339_s27  ;;  %s3009_s27 = sld [smem:[#allocation20_spill]] }
 0x469   : > { %v2129_v10 = vpop.eup %2128 }
 0x46a   : > { %v1220_v11 = vsel %vm833_vm3, %v2129_v10, 0.0  ;;  %v2131_v16 = vpop.eup %2130  ;;  %p3012_p12 = scmp.ne.s32.totalorder %s3009_s27, 0 }
 0x46b   : > { %1221 = vadd.xlane.f32.xlu0 %v1220_v11  ;;  %v1109_v18 = vsel %vm833_vm3, %v2131_v16, 0.0 }
 0x481   : > { %1004 = vrot.lane.b32.xlu0 %v2711_v25, %s2340_s0 }
 0x488   : > { %1110 = vadd.xlane.f32.xlu1 %v1109_v18 }
 0x499   : > { %1115 = vrot.lane.b32.xlu1 %v2711_v25, %s2341_s18  ;;  %s1592_s18 = sshll.u32 %s2669_s25, 4  ;;  %s1593_s18 = int_to_ptr.vmem [resolvable:$true] %s1592_s18 }
 0x49a   : > { %s2202_s3 = scalar_lea.vmem %s1593_s18, 128  ;;  %p2209_p4 = scmp.lt.s32.totalorder %s1593_s18, %s2207_s19 }
 0x49b   : > { %p2203_p1 = scmp.ne.s32.totalorder %s1593_s18, %s2202_s3  ;;  %p2210_p9 = scmp.lt.s32.totalorder %s2208_s8, %s2202_s3 }
 0x49d   : > { %1226 = vrot.lane.b32.xlu1 %v2711_v25, %s2342_s21  ;;  %p2204_p5 = pnand %p2203_p1, %p3012_p12  ;;  %p2211_p10 = por %p2210_p9, %p2209_p4 }
 0x49f   : > { %p2205_p3 = pneg %p2204_p5 }
 0x4a1   : > { %p2212_p0 = pnand %p2211_p10, %p2205_p3 }
 0x4dc   : > { %v888_v19 = vpop.xlane.xlu1 %887 }
 0x4dd   : > { %2132 = vrcp.f32 %v888_v19 }
 0x4e0   : > { %v893_v20 = vpop.permute.xlu1 %892 }
 0x4e1   : > { %v899_v21 = vsel %vm897_vm4, %v893_v20, 0 }
 0x4e2   : > { %1920 = vmatpush3.bf16.msra.mxu0 %v899_v21 }
 0x4e3   : > { %1931 = vmatprep.subr.bf16.mxu0 %v2330_v9 }
 0x4e4   : > { %v1000_v22 = vpop.xlane.xlu0 %999 }
 0x4e5   : > { %2134 = vrcp.f32 %v1000_v22 }
 0x4ea   : > { %v2133_v23 = vpop.eup %2132 }
 0x4eb   : > { %v890_v24 = vmul.f32 %v2133_v23, %v2125_v2 }
 0x4ed   : > { %v891_v26 = vpack.c.bf16 %v890_v24, %v890_v24 }
 0x4ef   : > { %1922 = vmatmul.mubr.msk.bf16.vlgmr.msra.gmra.mxu0 %vm833_vm3, %v891_v26 }
 0x4f0   : > { %1933 = vmatprep.mubr.msk.bf16.mxu0 %vm2331_vm2, %v2330_v9 }
 0x4f2   : > { %v2135_v25 = vpop.eup %2134 }
 0x4f3   : > { %v1002_v28 = vmul.f32 %v2135_v25, %v2127_v6 }
 0x4f4   : > { %v1222_v27 = vpop.xlane.xlu0 %1221 }
 0x4f5   : > { %v1003_v31 = vpack.c.bf16 %v1002_v28, %v1002_v28 }
 0x4f8   : > { %v1005_v29 = vpop.permute.xlu0 %1004 }
 0x4f9   : > { %v1010_v30 = vsel %vm897_vm4, %v1005_v29, 0  ;;  %v2800_v29 = vld [vmem:[%s720_s9] ss:$0 sm:$0xff]  ;;  %s3003_s9 = sld [smem:[#allocation32_spill]] }
 0x4fa   : > { %1932 = vmatpush3.bf16.msra.mxu0 %v1010_v30 }
 0x4fb   : > { %1943 = vmatprep.subr.bf16.mxu0 %v2330_v9 }
 0x4fd   : > { %1934 = vmatmul.mubr.msk.bf16.vlgmr.msra.gmra.mxu0 %vm833_vm3, %v1003_v31  ;;  %v2808_v31 = vld [vmem:[%s723_s24] ss:$0 sm:$0xff] }
 0x4fe   : > { %1945 = vmatprep.mubr.msk.bf16.mxu0 %vm2331_vm2, %v2330_v9 }
 0x4ff   : > { %s3004_s24 = scalar_lea.vmem %s3003_s9, %s2613_s28  ;;  %s3008_s28 = sld [smem:[#allocation26_spill]] }
 0x505   : > { %s1579_s15 = scalar_lea.sflag [#allocation4], %s3008_s28 }
 0x511   : > { %v1111_v32 = vpop.xlane.xlu1 %1110 }
 0x512   : > { %2136 = vrcp.f32 %v1111_v32 }
 0x513   : > { %2138 = vrcp.f32 %v1222_v27  ;;  %v2793_v27 = vld [vmem:[%s717_s20] ss:$0 sm:$0xff] }
 0x515   : > { %v1116_v33 = vpop.permute.xlu1 %1115 }
 0x516   : > { %v1121_v34 = vsel %vm897_vm4, %v1116_v33, 0 }
 0x517   : > { %1944 = vmatpush3.bf16.msra.mxu0 %v1121_v34 }
 0x518   : > { %1955 = vmatprep.subr.bf16.mxu0 %v2330_v9 }
 0x519   : > { %v1227_v37 = vpop.permute.xlu1 %1226 }
 0x51a   : > { %v1232_v40 = vsel %vm897_vm4, %v1227_v37, 0 }
 0x51f   : > { %v2137_v35 = vpop.eup %2136 }
 0x520   : > { %v1113_v36 = vmul.f32 %v2137_v35, %v2131_v16  ;;  %v2139_v39 = vpop.eup %2138 }
 0x521   : > { %v1224_v41 = vmul.f32 %v2139_v39, %v2129_v10 }
 0x522   : > { %v1114_v38 = vpack.c.bf16 %v1113_v36, %v1113_v36 }
 0x523   : > { %v1225_v42 = vpack.c.bf16 %v1224_v41, %v1224_v41  ;;  %v2116_v41 = vld [vmem:[%s2633_s22 + $0x8] sm:$0xff]  }
 0x524   : > { %1946 = vmatmul.mubr.msk.bf16.vlgmr.msra.gmra.mxu0 %vm833_vm3, %v1114_v38 }
 0x525   : > { %1956 = vmatpush3.bf16.msra.mxu0 %v1232_v40  ;;  %1957 = vmatprep.mubr.msk.bf16.mxu0 %vm2331_vm2, %v2330_v9 }
 0x526   : > { %1969 = vmatprep.subr.bf16.mxu0 %v2330_v9 }
 0x52c   : > { %1958 = vmatmul.mubr.msk.bf16.vlgmr.msra.gmra.mxu0 %vm833_vm3, %v1225_v42  ;;  %v2117_v42 = vld [vmem:[%s2633_s22] sm:$0xff]  }
 0x52d   : > { %1973 = vmatprep.mubr.msk.bf16.mxu0 %vm2331_vm2, %v2330_v9  ;;  %1970 = vmatpush3.bf16.msra.mxu0 %v2116_v41 }
 0x52e   : > { %1971 = vmatprep.subr.bf16.mxu0 %v2330_v9 }
 0x531   : > { %1972 = vmatpush3.bf16.msra.mxu0 %v2117_v42 }
 0x5af   : > { %v935_v43 = vpop.f32.mrf.mxu0 }
 0x5b0   : > { %v941_v2 = vpack.c.bf16 %v935_v43, %v935_v43  ;;  %v2119_v43 = vld [vmem:[%s2647_s29 + $0x10] sm:$0xff]  }
 0x5b1   : > { %v1923_v44 = vpop.f32.mrf.mxu0 }
 0x5b3   : > { %v938_v45 = vpop.f32.mrf.mxu0 }
 0x5b5   : > { %v1924_v46 = vpop.f32.mrf.mxu0 }
 0x5bd   : > { %v1046_v47 = vpop.f32.mrf.mxu0 }
 0x5be   : > { %v1052_v48 = vpack.c.bf16 %v1046_v47, %v1046_v47 }
 0x5bf   : > { %v1935_v49 = vpop.f32.mrf.mxu0 }
 0x5c0   : > { %1276 = vrot.lane.b32.xlu0 %v1052_v48, %s2343_s17 }
 0x5c1   : > { %v1049_v50 = vpop.f32.mrf.mxu0 }
 0x5c3   : > { %v1936_v51 = vpop.f32.mrf.mxu0 }
 0x5e4   : > { %v1157_v54 = vpop.f32.mrf.mxu0 }
 0x5e5   : > { %v1163_v55 = vpack.c.bf16 %v1157_v54, %v1157_v54  ;;  %v1857_v54 = vld [vmem:[%s3004_s24] ss:$0 sm:$0xff] }
 0x5e6   : > { %v1947_v56 = vpop.f32.mrf.mxu0 }
 0x5e7   : > { %1279 = vrot.lane.b32.xlu1 %v1163_v55, %s2344_s16  ;;  %s3010_s16 = sld [smem:[#allocation40_spill]] }
 0x5e8   : > { %v1160_v57 = vpop.f32.mrf.mxu0 }
 0x5ea   : > { %v1948_v58 = vpop.f32.mrf.mxu0 }
 0x5ec   : > { %v1268_v59 = vpop.f32.mrf.mxu0 }
 0x5ed   : > { %v1274_v60 = vpack.c.bf16 %v1268_v59, %v1268_v59 }
 0x5ee   : > { %v1959_v61 = vpop.f32.mrf.mxu0 }
 0x5ef   : > { %1282 = vrot.lane.b32.xlu0 %v1274_v60, %s2345_s2  ;;  %s3011_s2 = smov %s3010_s16 }
 0x5f0   : > { %v1271_v62 = vpop.f32.mrf.mxu0 }
 0x5f2   : > { %v1960_v63 = vpop.f32.mrf.mxu0 }
 0x632   : > { %v1277_v0 = vpop.permute.xlu0 %1276 }
 0x633   : > { %v1286_v4 = vsel %vm833_vm3, %v941_v2, %v1277_v0 }
 0x659   : > { %v1280_v3 = vpop.permute.xlu1 %1279 }
 0x65a   : > { %v1289_v5 = vsel %vm1287_vm5, %v1286_v4, %v1280_v3 }
 0x661   : > { %v1283_v6 = vpop.permute.xlu0 %1282 }
 0x662   : > { %v1292_v7 = vsel %vm1290_vm6, %v1289_v5, %v1283_v6 }
 0x663   : > { %1966 = vmatmul.mubr.msk.bf16.vlgmr.msra.gmra.mxu1 %vm738_vm1, %v1292_v7 }
 0x664   : > { %1985 = vmatprep.mubr.msk.bf16.mxu1 %vm2331_vm2, %v2330_v9 }
 0x723   : > { %v1352_v10 = vpop.f32.mrf.mxu1 }
 0x724   : > { %v1353_v11 = vadd.f32 %v1850_v8, %v1352_v10 }
 0x725   : > { %v1967_v12 = vpop.f32.mrf.mxu1 }
 0x726   : > { %v1358_v13 = vsel %vm738_vm1, %v1353_v11, 0.0 }
 0x727   : > { %1359 = vadd.xlane.f32.xlu1 %v1358_v13  ;;  %v1355_v14 = vpop.f32.mrf.mxu1 }
 0x729   : > { %v1968_v16 = vpop.f32.mrf.mxu1 }
 0x7b0   : > { %v1360_v18 = vpop.xlane.xlu1 %1359 }
 0x7b1   : > { %v1361_v19 = vmul.f32 0.03125, %v1360_v18 }
 0x7b3   : > { %v1362_v20 = vsub.f32 %v1353_v11, %v1361_v19 }
 0x7b5   : > { %v1363_v21 = vmul.f32 %v1362_v20, %v1362_v20 }
 0x7b7   : > { %v1364_v22 = vsel %vm738_vm1, %v1363_v21, 0.0 }
 0x7b8   : > { %1365 = vadd.xlane.f32.xlu0 %v1364_v22 }
 0x841   : > { %v1366_v23 = vpop.xlane.xlu0 %1365 }
 0x842   : > { %v1367_v24 = vmul.f32 0.03125, %v1366_v23 }
 0x844   : > { %v1368_v26 = vadd.f32 1e-05, %v1367_v24 }
 0x846   : > { %2140 = vrsqrt.f32 %v1368_v26 }
 0x853   : > { %v2141_v25 = vpop.eup %2140 }
 0x854   : > { %v1370_v28 = vmul.f32 %v2141_v25, %v1362_v20 }
 0x856   : > { %v1377_v30 = vmul.f32 %v2793_v27, %v1370_v28 }
 0x858   : > { %v1384_v32 = vadd.f32 %v2800_v29, %v1377_v30 }
 0x85a   : > { %v1391_v33 = vmul.f32 %v2808_v31, %v1384_v32 }
 0x85c   : > { %v2813_v34 = vadd.f32 %v1391_v33, %v2674_v1  ;;  %v2118_v1 = vld [vmem:[%s2647_s29 + $0x18] sm:$0xff]   ;;  %s3007_s29 = sld [smem:[#allocation16_spill]] }
 0x85d   : > { %1978 = vmatpush3.bf16.msra.mxu1 %v2118_v1 }
 0x85e   : > { %v1393_v35 = vsel %vm738_vm1, %v2813_v34, 0.0  ;;  %1979 = vmatprep.subr.bf16.mxu1 %v2330_v9 }
 0x85f   : > { %1394 = vadd.xlane.f32.xlu0 %v1393_v35 }
 0x861   : > { %1980 = vmatpush3.bf16.msra.mxu1 %v2119_v43 }
 0x862   : > { %1981 = vmatprep.subr.bf16.mxu1 %v2330_v9  ;;  %s1868_s0 = sshll.u32 %s3007_s29, 7 }
 0x863   : > { %s1590_s13 = scalar_lea.hbm %s3010_s16, %s1868_s0 }
 0x865   : > { %1982 = vmatpush3.bf16.msra.mxu1 %v2120_v52 }
 0x866   : > { %1983 = vmatprep.subr.bf16.mxu1 %v2330_v9  ;;  %v1861_v9 = vld [vmem:[%s3006_s7] ss:$0 sm:$0xff] }
 0x869   : > { %1984 = vmatpush3.bf16.msra.mxu1 %v2121_v53 }
 0x8e8   : > { %v1395_v36 = vpop.xlane.xlu0 %1394 }
 0x8e9   : > { %v1396_v37 = vmul.f32 0.03125, %v1395_v36 }
 0x8eb   : > { %v1397_v38 = vsub.f32 %v2813_v34, %v1396_v37 }
 0x8ed   : > { %v1398_v39 = vmul.f32 %v1397_v38, %v1397_v38 }
 0x8ef   : > { %v1399_v40 = vsel %vm738_vm1, %v1398_v39, 0.0 }
 0x8f0   : > { %1400 = vadd.xlane.f32.xlu1 %v1399_v40 }
 0x979   : > { %v1401_v44 = vpop.xlane.xlu1 %1400 }
 0x97a   : > { %v1402_v45 = vmul.f32 0.03125, %v1401_v44 }
 0x97c   : > { %v1403_v46 = vadd.f32 1e-05, %v1402_v45 }
 0x97e   : > { %2142 = vrsqrt.f32 %v1403_v46 }
 0x98b   : > { %v2143_v47 = vpop.eup %2142 }
 0x98c   : > { %v1405_v48 = vmul.f32 %v2143_v47, %v1397_v38 }
 0x98e   : > { %v1406_v49 = vmul.f32 %v2695_v15, %v1405_v48 }
 0x990   : > { %v1407_v50 = vadd.f32 %v2702_v17, %v1406_v49 }
 0x992   : > { %v1408_v51 = vpack.c.bf16 %v1407_v50, %v1407_v50 }
 0x994   : > { %1974 = vmatmul.mubr.msk.bf16.vlgmr.msra.gmra.mxu0 %vm738_vm1, %v1408_v51 }
 0xa54   : > { %v1469_v55 = vpop.f32.mrf.mxu0 }
 0xa55   : > { %v1470_v56 = vadd.f32 %v1857_v54, %v1469_v55 }
 0xa56   : > { %v1975_v15 = vpop.f32.mrf.mxu0 }
 0xa57   : > { %v1475_v57 = vmax.f32 %v1470_v56, 0.0 }
 0xa58   : > { %v1472_v17 = vpop.f32.mrf.mxu0 }
 0xa59   : > { %v1476_v58 = vpack.c.bf16 %v1475_v57, %v1475_v57 }
 0xa5a   : > { %v1976_v59 = vpop.f32.mrf.mxu0 }
 0xa5b   : > { %1986 = vmatmul.mubr.msk.bf16.vlgmr.msra.gmra.mxu1 %vm1516_vm7, %v1476_v58 }
 0xb1b   : > { %v1554_v60 = vpop.f32.mrf.mxu1 }
 0xb1c   : > { %v1555_v61 = vadd.f32 %v1861_v9, %v1554_v60 }
 0xb1d   : > { %v1987_v62 = vpop.f32.mrf.mxu1 }
 0xb1e   : > { %v1560_v63 = vsel %vm738_vm1, %v1555_v61, 0.0 }
 0xb1f   : > { %1561 = vadd.xlane.f32.xlu0 %v1560_v63  ;;  %v1557_v0 = vpop.f32.mrf.mxu1 }
 0xb21   : > { %v1988_v2 = vpop.f32.mrf.mxu1 }
 0xba8   : > { %v1562_v3 = vpop.xlane.xlu0 %1561 }
 0xba9   : > { %v1563_v4 = vmul.f32 0.03125, %v1562_v3 }
 0xbab   : > { %v1564_v5 = vsub.f32 %v1555_v61, %v1563_v4 }
 0xbad   : > { %v1565_v6 = vmul.f32 %v1564_v5, %v1564_v5 }
 0xbaf   : > { %v1566_v7 = vsel %vm738_vm1, %v1565_v6, 0.0 }
 0xbb0   : > { %1567 = vadd.xlane.f32.xlu1 %v1566_v7 }
 0xc39   : > { %v1568_v8 = vpop.xlane.xlu1 %1567 }
 0xc3a   : > { %v1569_v10 = vmul.f32 0.03125, %v1568_v8 }
 0xc3c   : > { %v1570_v11 = vadd.f32 1e-05, %v1569_v10 }
 0xc3e   : > { %2144 = vrsqrt.f32 %v1570_v11 }
 0xc4b   : > { %v2145_v12 = vpop.eup %2144 }
 0xc4c   : > { %v1572_v13 = vmul.f32 %v2145_v12, %v1564_v5 }
 0xc4e   : > { %v1573_v14 = vmul.f32 %v2793_v27, %v1572_v13 }
 0xc50   : > { %v1574_v16 = vadd.f32 %v2800_v29, %v1573_v14 }
 0xc52   : > { %v1575_v18 = vmul.f32 %v2808_v31, %v1574_v16 }
 0xc54   : > { %v1576_v19 = vadd.f32 %v1575_v18, %v2813_v34 }
 0xc56   : > { %1577 = vst.msk [vmem:[%s2669_s25] sm:$0xff] %vm738_vm1, %v1576_v19 }
 0xc57   : > { %2215 = shalt.err (!%p2212_p0)
}
 0xc58   : > { %s2216_s10 = scalar_lea.hbm %s1590_s13, 128  ;;  %s2220_s11 = scalar_lea.hbm %s3011_s2, 256 }
 0xc59   : > { %p2217_p11 = scmp.ne.s32.totalorder %s1590_s13, %s2216_s10  ;;  %p2221_p7 = scmp.lt.s32.totalorder %s1590_s13, %s3011_s2 }
 0xc5a   : > { %p2222_p8 = scmp.lt.s32.totalorder %s2220_s11, %s2216_s10 }
 0xc5b   : > { %p2218_p13 = pnand %p2217_p11, %p3012_p12 }
 0xc5c   : > { %p2223_p6 = por %p2222_p8, %p2221_p7 }
 0xc5d   : > { %p2219_p2 = pneg %p2218_p13 }
 0xc5f   : > { %p2224_p1 = pnand %p2223_p6, %p2219_p2 }
 0xc61   : > { %2227 = shalt.err (!%p2224_p1)
}
 0xc62   : > { %1993 = dma.vmem_to_hbm [thread:$0]  (%p3012_p12), %s1593_s18, 128, %s1590_s13, %s1579_s15  }
 0xc63 PF: > { %s3013_s5 = sld [smem:[#allocation19_spill]] }
 0xc64   : > { %s3014_s22 = sld [smem:[#allocation13_spill]] }
 0xc65   : > { %s3015_s20 = sld [smem:[#allocation21_spill]] }
 0xc69   : > { %p2007_p5 = scmp.ge.s32.totalorder %s3013_s5, 2 }
 0xc6a   : > { %s1604_s9 = sand.u32 1, %s3014_s22  }
 0xc6b   : > { %p3016_p3 = scmp.ne.s32.totalorder %s3015_s20, 0  ;;  %s1605_s24 = scalar_lea.sflag [#allocation4], %s1604_s9 }
 0xc6d   : > { %p2003_p4 = pnand %p2007_p5, %p3016_p3 }
 0xc6f   : > { %p2004_p9 = pneg %p2003_p4 }
 0xc71   : > { %2281 = dma.done.wait (%p2004_p9), %s1605_s24, 128  }
 0xc72   : > { %2283 = vsyncadd (%p2004_p9), %s1605_s24, 4294967168  ;;  %s33_s23 = sadd.s32 1, %s3013_s5   ;;  %s3017_s29 = sld [smem:[#allocation11_spill]] }
 0xc73   : > { %p30_p10 = scmp.ge.s32.totalorder %s33_s23, 6   ;;  %s3018_s30 = sld [smem:[#allocation12_spill]] }
 0xc74   : > { %s3019_s15 = sld [smem:[#allocation24_spill]] }
 0xc75   : > { %s3020_s16 = sld [smem:[#allocation14_spill]] }
 0xc76   : > { %s3021_s17 = sld [smem:[#allocation15_spill]] }
 0xc77   : > { %s3022_s18 = sld [smem:[#allocation25_spill]]  ;;  %32 = sbr.rel (!%p30_p10) target bundleno = 26 (0x1a), region = 174 }
 0xc78   : > { %s3023_s19 = sld [smem:[#allocation17_spill]] }
 0xc79   : > { %s3024_s20 = sld [smem:[#allocation18_spill]] }
 0xc7a   : > { %s3025_s21 = sld [smem:[#allocation22_spill]] }
 0xc7b   : > { %s3026_s22 = sld [smem:[#allocation23_spill]] }
 0xc7c   :  { %1610 = vsyncpa [#allocation3], 1 }
 0xc7d   :  { %1612 = vsyncpa [#allocation3 + $0x1], 1 }
 0xc7e   :  { %1613 = vsyncpa [#allocation6], 1 }
 0xc7f   :  { %1615 = vsyncpa [#allocation6 + $0x1], 1 }
 0xc80   :  { %1616 = vsyncpa [#allocation4], 1 }
 0xc81   :  { %1618 = vsyncpa [#allocation4 + $0x1], 1 }

</bundles_post_ra>
